<compile_context>
chip_gen: v7x
topology: tpu7x:2x2x1
jax: 0.10.0
libtpu: 0.0.40
codegen_flags: <defaults>
</compile_context>

<pallas_src>
import functools

import jax
import jax.numpy as jnp
from jax import lax
from jax.experimental import pallas as pl
from jax.experimental.pallas import tpu as pltpu


def _round_up(n, m):
    return ((n + m - 1) // m) * m


def rnn_kernel(x_ref, len_ref,
               w_ih0_ref, b0_ref, w_hh0_ref,
               w_cat1_ref, b1_ref,
               w_comb_ref, b_comb_ref,
               out_ref, *, hidden_size, seq_len):
    H = hidden_size
    T = seq_len
    Bt = x_ref.shape[0]                      # batch tile

    x = x_ref[...]                           # (Bt, T) f32
    lengths = len_ref[...]                   # (Bt, 1) int32
    w_ih0 = w_ih0_ref[...]                   # (1, 4H) f32   gate order [i,f,o,g]
    b0 = b0_ref[...]                         # (1, 4H) f32   (b_ih0 + b_hh0)
    w_hh0 = w_hh0_ref[...]                   # (H, 4H) bf16
    w_cat1 = w_cat1_ref[...]                 # (2H, 4H) bf16 stacked [w_ih1; w_hh1]
    b1 = b1_ref[...]                         # (1, 4H) f32   (b_ih1 + b_hh1)
    w_comb = w_comb_ref[...]                 # (1, H)  f32   folded fc1 @ out
    b_comb = b_comb_ref[...]                 # (1, 1)  f32

    def cell(gates, h, c, valid):
        # Gate order [i, f, o, g]: sigmoid only on the first 3H lanes, tanh only
        # on the last H lanes (halves the EUP element count per cell).
        sg = jax.nn.sigmoid(gates[:, :3 * H])
        g = jnp.tanh(gates[:, 3 * H:])
        i = sg[:, 0 * H:1 * H]
        f = sg[:, 1 * H:2 * H]
        o = sg[:, 2 * H:3 * H]
        c_new = f * c + i * g
        h_new = o * jnp.tanh(c_new)
        # Packed-sequence emulation: freeze state on padded steps.
        h_out = jnp.where(valid, h_new, h)
        c_out = jnp.where(valid, c_new, c)
        return h_out, c_out

    zeros = jnp.zeros((Bt, H), jnp.float32)
    h0, c0, h1, c1 = zeros, zeros, zeros, zeros

    # Fully unrolled time loop (T is a compile-time constant; every index/compare
    # below is static, giving the LLO scheduler cross-iteration visibility so the
    # layer-0 and layer-1 recurrence chains overlap).
    # TODO(synk): for T >> 8 switch to lax.fori_loop(..., unroll=4 or 8) to bound
    # live vreg ranges / instruction memory.
    for t in range(T):
        # One VPU compare, broadcast once per step (reused by 4 jnp.where calls).
        valid = jnp.broadcast_to(lengths > t, (Bt, H))
        # Layer-0 input projection (+ bias) computed in-loop: keeps the VMEM /
        # vreg footprint O(Bt*4H) instead of O(T*Bt*4H) (v7x VMEM budget).
        gx0 = x[:, t:t + 1] * w_ih0 + b0                           # (Bt, 4H)
        # Layer 0: recurrent projection on the MXU (bf16 operands, f32 accum).
        gates0 = gx0 + jnp.dot(h0.astype(jnp.bfloat16), w_hh0,
                               preferred_element_type=jnp.float32)
        h0, c0 = cell(gates0, h0, c0, valid)
        # Layer 1: single fused (Bt, 2H) @ (2H, 4H) matmul for input + recurrent.
        hcat = jnp.concatenate([h0, h1], axis=1).astype(jnp.bfloat16)
        gates1 = jnp.dot(hcat, w_cat1,
                         preferred_element_type=jnp.float32) + b1
        h1, c1 = cell(gates1, h1, c1, valid)
        # TODO(synk): if the bundle dump shows the MXU push slot binding, hold
        # w_hh0 / w_cat1 resident via pltpu.matmul_push_rhs across the unrolled
        # steps instead of re-latching them every jnp.dot.

    # fc1 and output folded into a single vector: out = h1 @ (w_fc1 @ w_out^T) + b_comb.
    res = jnp.sum(h1 * w_comb, axis=1, keepdims=True) + b_comb     # (Bt, 1)
    # Lane-dense store: batch along the lane axis (single relayout per tile).
    out_ref[...] = res.T.reshape(1, 1, Bt)


def _permute_gates_ifog(w):
    """Reorder the 4H gate axis (last dim) from PyTorch [i,f,g,o] to [i,f,o,g]."""
    H = w.shape[-1] // 4
    return jnp.concatenate([w[:, :2 * H], w[:, 3 * H:], w[:, 2 * H:3 * H]], axis=1)


def prepare_params(params):
    """One-time, host-side parameter folding for the kernel."""
    w_cat1 = jnp.concatenate([params["w_ih1"], params["w_hh1"]], axis=0)    # (2H, 4H)
    w_comb = (params["w_fc1"] @ params["w_out"].T).T                        # (1, H)
    b_comb = params["b_fc1"] @ params["w_out"].T + params["b_out"]          # (1, 1)
    return dict(
        w_ih0=_permute_gates_ifog(params["w_ih0"]),                         # f32 (1, 4H)
        b0=_permute_gates_ifog(params["b0"]),                               # f32 (1, 4H)
        w_hh0=_permute_gates_ifog(params["w_hh0"]).astype(jnp.bfloat16),    # bf16 (H, 4H)
        w_cat1=_permute_gates_ifog(w_cat1).astype(jnp.bfloat16),            # bf16 (2H, 4H)
        b1=_permute_gates_ifog(params["b1"]),                               # f32 (1, 4H)
        w_comb=w_comb, b_comb=b_comb)


def _resident_spec(arr):
    """Full-array block with a constant index_map: stays VMEM-resident across
    grid steps (Pallas skips the re-DMA when the block index does not change)."""
    zeros = (0,) * arr.ndim
    return pl.BlockSpec(arr.shape, lambda b, _z=zeros: _z)


def rnn_model_forward(x, mask, kparams, *, btile=None):
    B, T = x.shape
    H = kparams["w_hh0"].shape[0]
    # Per-sequence lengths instead of a dense (B, T) mask: one (B,1) int32 vreg.
    # NOTE: this reproduces pack_padded_sequence only for prefix masks
    # (contiguous 1s from t=0); checked host-side in __main__.
    lengths = jnp.sum(mask, axis=1).astype(jnp.int32)[:, None]              # (B, 1)

    # Batch tile: multiple of 8 (f32 sublane), capped at 256 so a large batch
    # fills the MXU rows (256x256 on v6e/v7x) without blowing VMEM; pad B up.
    if btile is None:
        btile = min(256, _round_up(B, 8))
    btile = max(8, _round_up(btile, 8))
    B_pad = _round_up(B, btile)
    n_tiles = B_pad // btile
    if B_pad != B:
        pad = B_pad - B
        x = jnp.pad(x, ((0, pad), (0, 0)))
        lengths = jnp.pad(lengths, ((0, pad), (0, 0)))   # padded rows: length 0

    kernel = functools.partial(rnn_kernel, hidden_size=H, seq_len=T)
    out = pl.pallas_call(
        kernel,
        # Lane-dense output slab: (tile, 1, btile) with batch along lanes.
        out_shape=jax.ShapeDtypeStruct((n_tiles, 1, btile), jnp.float32),
        grid_spec=pltpu.PrefetchScalarGridSpec(
            num_scalar_prefetch=0,
            grid=(n_tiles,),
            in_specs=[
                pl.BlockSpec((btile, T), lambda b: (b, 0)),      # x
                pl.BlockSpec((btile, 1), lambda b: (b, 0)),      # lengths
                _resident_spec(kparams["w_ih0"]),
                _resident_spec(kparams["b0"]),
                _resident_spec(kparams["w_hh0"]),
                _resident_spec(kparams["w_cat1"]),
                _resident_spec(kparams["b1"]),
                _resident_spec(kparams["w_comb"]),
                _resident_spec(kparams["b_comb"]),
            ],
            out_specs=pl.BlockSpec((1, 1, btile), lambda b: (b, 0, 0)),
        ),
        # Batch tiles are independent: parallel axis shards across TensorCores
        # on v7x and amortizes the fixed per-call cost everywhere.
        compiler_params=pltpu.CompilerParams(
            dimension_semantics=("parallel",)),
    )(x, lengths,
      kparams["w_ih0"], kparams["b0"], kparams["w_hh0"],
      kparams["w_cat1"], kparams["b1"],
      kparams["w_comb"], kparams["b_comb"])
    return out.reshape(B_pad)[:B]   # x.squeeze()


def rnn_model_reference(x, mask, params):
    """Pure-JAX reference (original, unfused/unpermuted parameterization, f32)."""
    B, T = x.shape
    H = params["w_hh0"].shape[0]

    def cell(gx, h, c, w_hh, b, m):
        gates = gx + h @ w_hh + b
        i = jax.nn.sigmoid(gates[:, :H])
        f = jax.nn.sigmoid(gates[:, H:2 * H])
        g = jnp.tanh(gates[:, 2 * H:3 * H])
        o = jax.nn.sigmoid(gates[:, 3 * H:])
        c_new = f * c + i * g
        h_new = o * jnp.tanh(c_new)
        return jnp.where(m > 0, h_new, h), jnp.where(m > 0, c_new, c)

    def step(carry, t):
        h0, c0, h1, c1 = carry
        x_t = lax.dynamic_slice_in_dim(x, t, 1, axis=1)
        m_t = lax.dynamic_slice_in_dim(mask, t, 1, axis=1)
        h0, c0 = cell(x_t * params["w_ih0"], h0, c0, params["w_hh0"], params["b0"], m_t)
        h1, c1 = cell(h0 @ params["w_ih1"], h1, c1, params["w_hh1"], params["b1"], m_t)
        return (h0, c0, h1, c1), None

    z = jnp.zeros((B, H), jnp.float32)
    (h0, c0, h1, c1), _ = lax.scan(step, (z, z, z, z), jnp.arange(T))
    fc = h1 @ params["w_fc1"] + params["b_fc1"]
    out = jnp.sum(fc * params["w_out"], axis=1, keepdims=True) + params["b_out"]
    return out[:, 0]


def init_params(key, hidden_size=32, fc1_out=16):
    """Deterministic synthetic parameters, PyTorch-style uniform init."""
    H, F1 = hidden_size, fc1_out
    ks = jax.random.split(key, 12)
    u = lambda k, shape, bound: jax.random.uniform(k, shape, jnp.float32, -bound, bound)
    kl = 1.0 / float(H) ** 0.5       # LSTM init bound
    kf = 1.0 / float(H) ** 0.5       # fc1 init bound (in_features = H)
    ko = 1.0 / float(F1) ** 0.5      # output init bound (in_features = F1)
    return dict(
        w_ih0=u(ks[0], (1, 4 * H), kl),                                  # W_ih layer0 (transposed)
        w_hh0=u(ks[1], (H, 4 * H), kl),                                  # W_hh layer0 (transposed)
        b0=u(ks[2], (1, 4 * H), kl) + u(ks[3], (1, 4 * H), kl),          # b_ih + b_hh
        w_ih1=u(ks[4], (H, 4 * H), kl),
        w_hh1=u(ks[5], (H, 4 * H), kl),
        b1=u(ks[6], (1, 4 * H), kl) + u(ks[7], (1, 4 * H), kl),
        w_fc1=u(ks[8], (H, F1), kf),
        b_fc1=u(ks[9], (1, F1), kf),
        w_out=u(ks[10], (1, F1), ko),                                    # output weight (out=1, in=F1)
        b_out=u(ks[11], (1, 1), ko),
    )


if __name__ == "__main__":
    B, T, H, F1 = 12, 8, 32, 16
    key = jax.random.PRNGKey(0)
    kx, kp = jax.random.split(key)

    x = jax.random.normal(kx, (B, T), jnp.float32)
    lengths = jnp.array([8, 5, 3, 6, 8, 2, 7, 4, 1, 8, 6, 5], jnp.int32)  # variable valid lengths
    mask = (jnp.arange(T)[None, :] < lengths[:, None]).astype(jnp.float32)

    # pack_padded_sequence emulation requires a prefix mask (1s then 0s along T).
    assert bool(jnp.all(mask[:, 1:] <= mask[:, :-1])), "mask must be a prefix mask"

    params = init_params(kp, H, F1)
    kparams = prepare_params(params)

    # btile=8 with B=12 -> B padded to 16, grid=(2,) over parallel batch tiles.
    out = rnn_model_forward(x, mask, kparams, btile=8)
    out = jax.block_until_ready(out)

    ref = rnn_model_reference(x, mask, params)
    assert out.shape == (B,), out.shape
    # bf16 matmul operands in the kernel vs f32 reference: loosened tolerance.
    assert jnp.allclose(out, ref, rtol=2e-2, atol=2e-2), (out, ref)

    print("KERNEL_OK")
</pallas_src>

<mosaic_0001>
module attributes {stable_mosaic.version = 11 : i64} {
  func.func @rnn_kernel(%arg0: i32, %arg1: memref<8x8xf32, #tpu.memory_space<vmem>>, %arg2: memref<8x1xi32, #tpu.memory_space<vmem>>, %arg3: memref<1x128xf32, #tpu.memory_space<vmem>>, %arg4: memref<1x128xf32, #tpu.memory_space<vmem>>, %arg5: memref<32x128xbf16, #tpu.memory_space<vmem>>, %arg6: memref<64x128xbf16, #tpu.memory_space<vmem>>, %arg7: memref<1x128xf32, #tpu.memory_space<vmem>>, %arg8: memref<1x32xf32, #tpu.memory_space<vmem>>, %arg9: memref<1x1xf32, #tpu.memory_space<vmem>>, %arg10: memref<1x1x8xf32, #tpu.memory_space<vmem>>) attributes {dimension_semantics = [#tpu.dimension_semantics<parallel>], iteration_bounds = array<i64: 2>, scalar_prefetch = 0 : i64, scratch_operands = 0 : i64, tpu.core_type = #tpu.core_type<tc>, window_params = [{transform_indices = @transform_0, window_bounds = array<i64: 8, 8>}, {transform_indices = @transform_1, window_bounds = array<i64: 8, 1>}, {pipeline_mode = #tpu.pipeline_mode<synchronous>, transform_indices = @transform_2, window_bounds = array<i64: 1, 128>}, {pipeline_mode = #tpu.pipeline_mode<synchronous>, transform_indices = @transform_3, window_bounds = array<i64: 1, 128>}, {pipeline_mode = #tpu.pipeline_mode<synchronous>, transform_indices = @transform_4, window_bounds = array<i64: 32, 128>}, {pipeline_mode = #tpu.pipeline_mode<synchronous>, transform_indices = @transform_5, window_bounds = array<i64: 64, 128>}, {pipeline_mode = #tpu.pipeline_mode<synchronous>, transform_indices = @transform_6, window_bounds = array<i64: 1, 128>}, {pipeline_mode = #tpu.pipeline_mode<synchronous>, transform_indices = @transform_7, window_bounds = array<i64: 1, 32>}, {pipeline_mode = #tpu.pipeline_mode<synchronous>, transform_indices = @transform_8, window_bounds = array<i64: 1, 1>}, {transform_indices = @transform_9, window_bounds = array<i64: 1, 1, 8>}]} {
    %c0 = arith.constant 0 : index
    %c0_0 = arith.constant 0 : index
    %0 = vector.load %arg1[%c0, %c0_0] : memref<8x8xf32, #tpu.memory_space<vmem>>, vector<8x8xf32>
    %c0_1 = arith.constant 0 : index
    %c0_2 = arith.constant 0 : index
    %1 = vector.load %arg2[%c0_1, %c0_2] : memref<8x1xi32, #tpu.memory_space<vmem>>, vector<8x1xi32>
    %c0_3 = arith.constant 0 : index
    %c0_4 = arith.constant 0 : index
    %2 = vector.load %arg3[%c0_3, %c0_4] : memref<1x128xf32, #tpu.memory_space<vmem>>, vector<1x128xf32>
    %c0_5 = arith.constant 0 : index
    %c0_6 = arith.constant 0 : index
    %3 = vector.load %arg4[%c0_5, %c0_6] : memref<1x128xf32, #tpu.memory_space<vmem>>, vector<1x128xf32>
    %c0_7 = arith.constant 0 : index
    %c0_8 = arith.constant 0 : index
    %4 = vector.load %arg5[%c0_7, %c0_8] : memref<32x128xbf16, #tpu.memory_space<vmem>>, vector<32x128xbf16>
    %c0_9 = arith.constant 0 : index
    %c0_10 = arith.constant 0 : index
    %5 = vector.load %arg6[%c0_9, %c0_10] : memref<64x128xbf16, #tpu.memory_space<vmem>>, vector<64x128xbf16>
    %c0_11 = arith.constant 0 : index
    %c0_12 = arith.constant 0 : index
    %6 = vector.load %arg7[%c0_11, %c0_12] : memref<1x128xf32, #tpu.memory_space<vmem>>, vector<1x128xf32>
    %c0_13 = arith.constant 0 : index
    %c0_14 = arith.constant 0 : index
    %7 = vector.load %arg8[%c0_13, %c0_14] : memref<1x32xf32, #tpu.memory_space<vmem>>, vector<1x32xf32>
    %c0_15 = arith.constant 0 : index
    %c0_16 = arith.constant 0 : index
    %8 = vector.load %arg9[%c0_15, %c0_16] : memref<1x1xf32, #tpu.memory_space<vmem>>, vector<1x1xf32>
    %cst = arith.constant 0.000000e+00 : f32
    %9 = vector.broadcast %cst : f32 to vector<8x32xf32>
    %c0_i32 = arith.constant 0 : i32
    %10 = vector.broadcast %c0_i32 : i32 to vector<8x1xi32>
    %11 = arith.cmpi sgt, %1, %10 : vector<8x1xi32>
    %12 = vector.shape_cast %11 : vector<8x1xi1> to vector<8x1xi1>
    %13 = vector.broadcast %12 : vector<8x1xi1> to vector<8x32xi1>
    %14 = vector.extract_strided_slice %0 {offsets = [0, 0], sizes = [8, 1], strides = [1, 1]} : vector<8x8xf32> to vector<8x1xf32>
    %15 = vector.broadcast %14 : vector<8x1xf32> to vector<8x128xf32>
    %16 = vector.broadcast %2 : vector<1x128xf32> to vector<8x128xf32>
    %17 = arith.mulf %15, %16 : vector<8x128xf32>
    %18 = vector.broadcast %3 : vector<1x128xf32> to vector<8x128xf32>
    %19 = arith.addf %17, %18 : vector<8x128xf32>
    %20 = arith.truncf %9 : vector<8x32xf32> to vector<8x32xbf16>
    %cst_17 = arith.constant dense<0.000000e+00> : vector<8x128xf32>
    %21 = tpu.matmul %20, %4, %cst_17 {dimension_numbers = #tpu.dot_dimension_numbers<[1], [0], [0], [1], [0, 0, 1, 1], [], []>} : vector<8x32xbf16>, vector<32x128xbf16>, vector<8x128xf32> -> vector<8x128xf32>
    %22 = arith.addf %19, %21 : vector<8x128xf32>
    %23 = vector.extract_strided_slice %22 {offsets = [0, 0], sizes = [8, 96], strides = [1, 1]} : vector<8x128xf32> to vector<8x96xf32>
    %24 = arith.negf %23 : vector<8x96xf32>
    %25 = math.exp %24 : vector<8x96xf32>
    %cst_18 = arith.constant 1.000000e+00 : f32
    %26 = vector.broadcast %cst_18 : f32 to vector<8x96xf32>
    %27 = arith.addf %26, %25 : vector<8x96xf32>
    %28 = arith.divf %26, %27 : vector<8x96xf32>
    %29 = vector.extract_strided_slice %22 {offsets = [0, 96], sizes = [8, 32], strides = [1, 1]} : vector<8x128xf32> to vector<8x32xf32>
    %30 = math.tanh %29 : vector<8x32xf32>
    %31 = vector.extract_strided_slice %28 {offsets = [0, 0], sizes = [8, 32], strides = [1, 1]} : vector<8x96xf32> to vector<8x32xf32>
    %32 = vector.extract_strided_slice %28 {offsets = [0, 32], sizes = [8, 32], strides = [1, 1]} : vector<8x96xf32> to vector<8x32xf32>
    %33 = vector.extract_strided_slice %28 {offsets = [0, 64], sizes = [8, 32], strides = [1, 1]} : vector<8x96xf32> to vector<8x32xf32>
    %34 = arith.mulf %32, %9 : vector<8x32xf32>
    %35 = arith.mulf %31, %30 : vector<8x32xf32>
    %36 = arith.addf %34, %35 : vector<8x32xf32>
    %37 = math.tanh %36 : vector<8x32xf32>
    %38 = arith.mulf %33, %37 : vector<8x32xf32>
    %39 = arith.select %13, %38, %9 : vector<8x32xi1>, vector<8x32xf32>
    %40 = arith.select %13, %36, %9 : vector<8x32xi1>, vector<8x32xf32>
    %41 = tpu.concatenate %39, %9 in 1 : vector<8x32xf32>, vector<8x32xf32> -> vector<8x64xf32>
    %42 = arith.truncf %41 : vector<8x64xf32> to vector<8x64xbf16>
    %cst_19 = arith.constant dense<0.000000e+00> : vector<8x128xf32>
    %43 = tpu.matmul %42, %5, %cst_19 {dimension_numbers = #tpu.dot_dimension_numbers<[1], [0], [0], [1], [0, 0, 1, 1], [], []>} : vector<8x64xbf16>, vector<64x128xbf16>, vector<8x128xf32> -> vector<8x128xf32>
    %44 = vector.broadcast %6 : vector<1x128xf32> to vector<8x128xf32>
    %45 = arith.addf %43, %44 : vector<8x128xf32>
    %46 = vector.extract_strided_slice %45 {offsets = [0, 0], sizes = [8, 96], strides = [1, 1]} : vector<8x128xf32> to vector<8x96xf32>
    %47 = arith.negf %46 : vector<8x96xf32>
    %48 = math.exp %47 : vector<8x96xf32>
    %cst_20 = arith.constant 1.000000e+00 : f32
    %49 = vector.broadcast %cst_20 : f32 to vector<8x96xf32>
    %50 = arith.addf %49, %48 : vector<8x96xf32>
    %51 = arith.divf %49, %50 : vector<8x96xf32>
    %52 = vector.extract_strided_slice %45 {offsets = [0, 96], sizes = [8, 32], strides = [1, 1]} : vector<8x128xf32> to vector<8x32xf32>
    %53 = math.tanh %52 : vector<8x32xf32>
    %54 = vector.extract_strided_slice %51 {offsets = [0, 0], sizes = [8, 32], strides = [1, 1]} : vector<8x96xf32> to vector<8x32xf32>
    %55 = vector.extract_strided_slice %51 {offsets = [0, 32], sizes = [8, 32], strides = [1, 1]} : vector<8x96xf32> to vector<8x32xf32>
    %56 = vector.extract_strided_slice %51 {offsets = [0, 64], sizes = [8, 32], strides = [1, 1]} : vector<8x96xf32> to vector<8x32xf32>
    %57 = arith.mulf %55, %9 : vector<8x32xf32>
    %58 = arith.mulf %54, %53 : vector<8x32xf32>
    %59 = arith.addf %57, %58 : vector<8x32xf32>
    %60 = math.tanh %59 : vector<8x32xf32>
    %61 = arith.mulf %56, %60 : vector<8x32xf32>
    %62 = arith.select %13, %61, %9 : vector<8x32xi1>, vector<8x32xf32>
    %63 = arith.select %13, %59, %9 : vector<8x32xi1>, vector<8x32xf32>
    %c1_i32 = arith.constant 1 : i32
    %64 = vector.broadcast %c1_i32 : i32 to vector<8x1xi32>
    %65 = arith.cmpi sgt, %1, %64 : vector<8x1xi32>
    %66 = vector.shape_cast %65 : vector<8x1xi1> to vector<8x1xi1>
    %67 = vector.broadcast %66 : vector<8x1xi1> to vector<8x32xi1>
    %68 = vector.extract_strided_slice %0 {offsets = [0, 1], sizes = [8, 1], strides = [1, 1]} : vector<8x8xf32> to vector<8x1xf32>
    %69 = vector.broadcast %68 : vector<8x1xf32> to vector<8x128xf32>
    %70 = vector.broadcast %2 : vector<1x128xf32> to vector<8x128xf32>
    %71 = arith.mulf %69, %70 : vector<8x128xf32>
    %72 = vector.broadcast %3 : vector<1x128xf32> to vector<8x128xf32>
    %73 = arith.addf %71, %72 : vector<8x128xf32>
    %74 = arith.truncf %39 : vector<8x32xf32> to vector<8x32xbf16>
    %cst_21 = arith.constant dense<0.000000e+00> : vector<8x128xf32>
    %75 = tpu.matmul %74, %4, %cst_21 {dimension_numbers = #tpu.dot_dimension_numbers<[1], [0], [0], [1], [0, 0, 1, 1], [], []>} : vector<8x32xbf16>, vector<32x128xbf16>, vector<8x128xf32> -> vector<8x128xf32>
    %76 = arith.addf %73, %75 : vector<8x128xf32>
    %77 = vector.extract_strided_slice %76 {offsets = [0, 0], sizes = [8, 96], strides = [1, 1]} : vector<8x128xf32> to vector<8x96xf32>
    %78 = arith.negf %77 : vector<8x96xf32>
    %79 = math.exp %78 : vector<8x96xf32>
    %cst_22 = arith.constant 1.000000e+00 : f32
    %80 = vector.broadcast %cst_22 : f32 to vector<8x96xf32>
    %81 = arith.addf %80, %79 : vector<8x96xf32>
    %82 = arith.divf %80, %81 : vector<8x96xf32>
    %83 = vector.extract_strided_slice %76 {offsets = [0, 96], sizes = [8, 32], strides = [1, 1]} : vector<8x128xf32> to vector<8x32xf32>
    %84 = math.tanh %83 : vector<8x32xf32>
    %85 = vector.extract_strided_slice %82 {offsets = [0, 0], sizes = [8, 32], strides = [1, 1]} : vector<8x96xf32> to vector<8x32xf32>
    %86 = vector.extract_strided_slice %82 {offsets = [0, 32], sizes = [8, 32], strides = [1, 1]} : vector<8x96xf32> to vector<8x32xf32>
    %87 = vector.extract_strided_slice %82 {offsets = [0, 64], sizes = [8, 32], strides = [1, 1]} : vector<8x96xf32> to vector<8x32xf32>
    %88 = arith.mulf %86, %40 : vector<8x32xf32>
    %89 = arith.mulf %85, %84 : vector<8x32xf32>
    %90 = arith.addf %88, %89 : vector<8x32xf32>
    %91 = math.tanh %90 : vector<8x32xf32>
    %92 = arith.mulf %87, %91 : vector<8x32xf32>
    %93 = arith.select %67, %92, %39 : vector<8x32xi1>, vector<8x32xf32>
    %94 = arith.select %67, %90, %40 : vector<8x32xi1>, vector<8x32xf32>
    %95 = tpu.concatenate %93, %62 in 1 : vector<8x32xf32>, vector<8x32xf32> -> vector<8x64xf32>
    %96 = arith.truncf %95 : vector<8x64xf32> to vector<8x64xbf16>
    %cst_23 = arith.constant dense<0.000000e+00> : vector<8x128xf32>
    %97 = tpu.matmul %96, %5, %cst_23 {dimension_numbers = #tpu.dot_dimension_numbers<[1], [0], [0], [1], [0, 0, 1, 1], [], []>} : vector<8x64xbf16>, vector<64x128xbf16>, vector<8x128xf32> -> vector<8x128xf32>
    %98 = vector.broadcast %6 : vector<1x128xf32> to vector<8x128xf32>
    %99 = arith.addf %97, %98 : vector<8x128xf32>
    %100 = vector.extract_strided_slice %99 {offsets = [0, 0], sizes = [8, 96], strides = [1, 1]} : vector<8x128xf32> to vector<8x96xf32>
    %101 = arith.negf %100 : vector<8x96xf32>
    %102 = math.exp %101 : vector<8x96xf32>
    %cst_24 = arith.constant 1.000000e+00 : f32
    %103 = vector.broadcast %cst_24 : f32 to vector<8x96xf32>
    %104 = arith.addf %103, %102 : vector<8x96xf32>
    %105 = arith.divf %103, %104 : vector<8x96xf32>
    %106 = vector.extract_strided_slice %99 {offsets = [0, 96], sizes = [8, 32], strides = [1, 1]} : vector<8x128xf32> to vector<8x32xf32>
    %107 = math.tanh %106 : vector<8x32xf32>
    %108 = vector.extract_strided_slice %105 {offsets = [0, 0], sizes = [8, 32], strides = [1, 1]} : vector<8x96xf32> to vector<8x32xf32>
    %109 = vector.extract_strided_slice %105 {offsets = [0, 32], sizes = [8, 32], strides = [1, 1]} : vector<8x96xf32> to vector<8x32xf32>
    %110 = vector.extract_strided_slice %105 {offsets = [0, 64], sizes = [8, 32], strides = [1, 1]} : vector<8x96xf32> to vector<8x32xf32>
    %111 = arith.mulf %109, %63 : vector<8x32xf32>
    %112 = arith.mulf %108, %107 : vector<8x32xf32>
    %113 = arith.addf %111, %112 : vector<8x32xf32>
    %114 = math.tanh %113 : vector<8x32xf32>
    %115 = arith.mulf %110, %114 : vector<8x32xf32>
    %116 = arith.select %67, %115, %62 : vector<8x32xi1>, vector<8x32xf32>
    %117 = arith.select %67, %113, %63 : vector<8x32xi1>, vector<8x32xf32>
    %c2_i32 = arith.constant 2 : i32
    %118 = vector.broadcast %c2_i32 : i32 to vector<8x1xi32>
    %119 = arith.cmpi sgt, %1, %118 : vector<8x1xi32>
    %120 = vector.shape_cast %119 : vector<8x1xi1> to vector<8x1xi1>
    %121 = vector.broadcast %120 : vector<8x1xi1> to vector<8x32xi1>
    %122 = vector.extract_strided_slice %0 {offsets = [0, 2], sizes = [8, 1], strides = [1, 1]} : vector<8x8xf32> to vector<8x1xf32>
    %123 = vector.broadcast %122 : vector<8x1xf32> to vector<8x128xf32>
    %124 = vector.broadcast %2 : vector<1x128xf32> to vector<8x128xf32>
    %125 = arith.mulf %123, %124 : vector<8x128xf32>
    %126 = vector.broadcast %3 : vector<1x128xf32> to vector<8x128xf32>
    %127 = arith.addf %125, %126 : vector<8x128xf32>
    %128 = arith.truncf %93 : vector<8x32xf32> to vector<8x32xbf16>
    %cst_25 = arith.constant dense<0.000000e+00> : vector<8x128xf32>
    %129 = tpu.matmul %128, %4, %cst_25 {dimension_numbers = #tpu.dot_dimension_numbers<[1], [0], [0], [1], [0, 0, 1, 1], [], []>} : vector<8x32xbf16>, vector<32x128xbf16>, vector<8x128xf32> -> vector<8x128xf32>
    %130 = arith.addf %127, %129 : vector<8x128xf32>
    %131 = vector.extract_strided_slice %130 {offsets = [0, 0], sizes = [8, 96], strides = [1, 1]} : vector<8x128xf32> to vector<8x96xf32>
    %132 = arith.negf %131 : vector<8x96xf32>
    %133 = math.exp %132 : vector<8x96xf32>
    %cst_26 = arith.constant 1.000000e+00 : f32
    %134 = vector.broadcast %cst_26 : f32 to vector<8x96xf32>
    %135 = arith.addf %134, %133 : vector<8x96xf32>
    %136 = arith.divf %134, %135 : vector<8x96xf32>
    %137 = vector.extract_strided_slice %130 {offsets = [0, 96], sizes = [8, 32], strides = [1, 1]} : vector<8x128xf32> to vector<8x32xf32>
    %138 = math.tanh %137 : vector<8x32xf32>
    %139 = vector.extract_strided_slice %136 {offsets = [0, 0], sizes = [8, 32], strides = [1, 1]} : vector<8x96xf32> to vector<8x32xf32>
    %140 = vector.extract_strided_slice %136 {offsets = [0, 32], sizes = [8, 32], strides = [1, 1]} : vector<8x96xf32> to vector<8x32xf32>
    %141 = vector.extract_strided_slice %136 {offsets = [0, 64], sizes = [8, 32], strides = [1, 1]} : vector<8x96xf32> to vector<8x32xf32>
    %142 = arith.mulf %140, %94 : vector<8x32xf32>
    %143 = arith.mulf %139, %138 : vector<8x32xf32>
    %144 = arith.addf %142, %143 : vector<8x32xf32>
    %145 = math.tanh %144 : vector<8x32xf32>
    %146 = arith.mulf %141, %145 : vector<8x32xf32>
    %147 = arith.select %121, %146, %93 : vector<8x32xi1>, vector<8x32xf32>
    %148 = arith.select %121, %144, %94 : vector<8x32xi1>, vector<8x32xf32>
    %149 = tpu.concatenate %147, %116 in 1 : vector<8x32xf32>, vector<8x32xf32> -> vector<8x64xf32>
    %150 = arith.truncf %149 : vector<8x64xf32> to vector<8x64xbf16>
    %cst_27 = arith.constant dense<0.000000e+00> : vector<8x128xf32>
    %151 = tpu.matmul %150, %5, %cst_27 {dimension_numbers = #tpu.dot_dimension_numbers<[1], [0], [0], [1], [0, 0, 1, 1], [], []>} : vector<8x64xbf16>, vector<64x128xbf16>, vector<8x128xf32> -> vector<8x128xf32>
    %152 = vector.broadcast %6 : vector<1x128xf32> to vector<8x128xf32>
    %153 = arith.addf %151, %152 : vector<8x128xf32>
    %154 = vector.extract_strided_slice %153 {offsets = [0, 0], sizes = [8, 96], strides = [1, 1]} : vector<8x128xf32> to vector<8x96xf32>
    %155 = arith.negf %154 : vector<8x96xf32>
    %156 = math.exp %155 : vector<8x96xf32>
    %cst_28 = arith.constant 1.000000e+00 : f32
    %157 = vector.broadcast %cst_28 : f32 to vector<8x96xf32>
    %158 = arith.addf %157, %156 : vector<8x96xf32>
    %159 = arith.divf %157, %158 : vector<8x96xf32>
    %160 = vector.extract_strided_slice %153 {offsets = [0, 96], sizes = [8, 32], strides = [1, 1]} : vector<8x128xf32> to vector<8x32xf32>
    %161 = math.tanh %160 : vector<8x32xf32>
    %162 = vector.extract_strided_slice %159 {offsets = [0, 0], sizes = [8, 32], strides = [1, 1]} : vector<8x96xf32> to vector<8x32xf32>
    %163 = vector.extract_strided_slice %159 {offsets = [0, 32], sizes = [8, 32], strides = [1, 1]} : vector<8x96xf32> to vector<8x32xf32>
    %164 = vector.extract_strided_slice %159 {offsets = [0, 64], sizes = [8, 32], strides = [1, 1]} : vector<8x96xf32> to vector<8x32xf32>
    %165 = arith.mulf %163, %117 : vector<8x32xf32>
    %166 = arith.mulf %162, %161 : vector<8x32xf32>
    %167 = arith.addf %165, %166 : vector<8x32xf32>
    %168 = math.tanh %167 : vector<8x32xf32>
    %169 = arith.mulf %164, %168 : vector<8x32xf32>
    %170 = arith.select %121, %169, %116 : vector<8x32xi1>, vector<8x32xf32>
    %171 = arith.select %121, %167, %117 : vector<8x32xi1>, vector<8x32xf32>
    %c3_i32 = arith.constant 3 : i32
    %172 = vector.broadcast %c3_i32 : i32 to vector<8x1xi32>
    %173 = arith.cmpi sgt, %1, %172 : vector<8x1xi32>
    %174 = vector.shape_cast %173 : vector<8x1xi1> to vector<8x1xi1>
    %175 = vector.broadcast %174 : vector<8x1xi1> to vector<8x32xi1>
    %176 = vector.extract_strided_slice %0 {offsets = [0, 3], sizes = [8, 1], strides = [1, 1]} : vector<8x8xf32> to vector<8x1xf32>
    %177 = vector.broadcast %176 : vector<8x1xf32> to vector<8x128xf32>
    %178 = vector.broadcast %2 : vector<1x128xf32> to vector<8x128xf32>
    %179 = arith.mulf %177, %178 : vector<8x128xf32>
    %180 = vector.broadcast %3 : vector<1x128xf32> to vector<8x128xf32>
    %181 = arith.addf %179, %180 : vector<8x128xf32>
    %182 = arith.truncf %147 : vector<8x32xf32> to vector<8x32xbf16>
    %cst_29 = arith.constant dense<0.000000e+00> : vector<8x128xf32>
    %183 = tpu.matmul %182, %4, %cst_29 {dimension_numbers = #tpu.dot_dimension_numbers<[1], [0], [0], [1], [0, 0, 1, 1], [], []>} : vector<8x32xbf16>, vector<32x128xbf16>, vector<8x128xf32> -> vector<8x128xf32>
    %184 = arith.addf %181, %183 : vector<8x128xf32>
    %185 = vector.extract_strided_slice %184 {offsets = [0, 0], sizes = [8, 96], strides = [1, 1]} : vector<8x128xf32> to vector<8x96xf32>
    %186 = arith.negf %185 : vector<8x96xf32>
    %187 = math.exp %186 : vector<8x96xf32>
    %cst_30 = arith.constant 1.000000e+00 : f32
    %188 = vector.broadcast %cst_30 : f32 to vector<8x96xf32>
    %189 = arith.addf %188, %187 : vector<8x96xf32>
    %190 = arith.divf %188, %189 : vector<8x96xf32>
    %191 = vector.extract_strided_slice %184 {offsets = [0, 96], sizes = [8, 32], strides = [1, 1]} : vector<8x128xf32> to vector<8x32xf32>
    %192 = math.tanh %191 : vector<8x32xf32>
    %193 = vector.extract_strided_slice %190 {offsets = [0, 0], sizes = [8, 32], strides = [1, 1]} : vector<8x96xf32> to vector<8x32xf32>
    %194 = vector.extract_strided_slice %190 {offsets = [0, 32], sizes = [8, 32], strides = [1, 1]} : vector<8x96xf32> to vector<8x32xf32>
    %195 = vector.extract_strided_slice %190 {offsets = [0, 64], sizes = [8, 32], strides = [1, 1]} : vector<8x96xf32> to vector<8x32xf32>
    %196 = arith.mulf %194, %148 : vector<8x32xf32>
    %197 = arith.mulf %193, %192 : vector<8x32xf32>
    %198 = arith.addf %196, %197 : vector<8x32xf32>
    %199 = math.tanh %198 : vector<8x32xf32>
    %200 = arith.mulf %195, %199 : vector<8x32xf32>
    %201 = arith.select %175, %200, %147 : vector<8x32xi1>, vector<8x32xf32>
    %202 = arith.select %175, %198, %148 : vector<8x32xi1>, vector<8x32xf32>
    %203 = tpu.concatenate %201, %170 in 1 : vector<8x32xf32>, vector<8x32xf32> -> vector<8x64xf32>
    %204 = arith.truncf %203 : vector<8x64xf32> to vector<8x64xbf16>
    %cst_31 = arith.constant dense<0.000000e+00> : vector<8x128xf32>
    %205 = tpu.matmul %204, %5, %cst_31 {dimension_numbers = #tpu.dot_dimension_numbers<[1], [0], [0], [1], [0, 0, 1, 1], [], []>} : vector<8x64xbf16>, vector<64x128xbf16>, vector<8x128xf32> -> vector<8x128xf32>
    %206 = vector.broadcast %6 : vector<1x128xf32> to vector<8x128xf32>
    %207 = arith.addf %205, %206 : vector<8x128xf32>
    %208 = vector.extract_strided_slice %207 {offsets = [0, 0], sizes = [8, 96], strides = [1, 1]} : vector<8x128xf32> to vector<8x96xf32>
    %209 = arith.negf %208 : vector<8x96xf32>
    %210 = math.exp %209 : vector<8x96xf32>
    %cst_32 = arith.constant 1.000000e+00 : f32
    %211 = vector.broadcast %cst_32 : f32 to vector<8x96xf32>
    %212 = arith.addf %211, %210 : vector<8x96xf32>
    %213 = arith.divf %211, %212 : vector<8x96xf32>
    %214 = vector.extract_strided_slice %207 {offsets = [0, 96], sizes = [8, 32], strides = [1, 1]} : vector<8x128xf32> to vector<8x32xf32>
    %215 = math.tanh %214 : vector<8x32xf32>
    %216 = vector.extract_strided_slice %213 {offsets = [0, 0], sizes = [8, 32], strides = [1, 1]} : vector<8x96xf32> to vector<8x32xf32>
    %217 = vector.extract_strided_slice %213 {offsets = [0, 32], sizes = [8, 32], strides = [1, 1]} : vector<8x96xf32> to vector<8x32xf32>
    %218 = vector.extract_strided_slice %213 {offsets = [0, 64], sizes = [8, 32], strides = [1, 1]} : vector<8x96xf32> to vector<8x32xf32>
    %219 = arith.mulf %217, %171 : vector<8x32xf32>
    %220 = arith.mulf %216, %215 : vector<8x32xf32>
    %221 = arith.addf %219, %220 : vector<8x32xf32>
    %222 = math.tanh %221 : vector<8x32xf32>
    %223 = arith.mulf %218, %222 : vector<8x32xf32>
    %224 = arith.select %175, %223, %170 : vector<8x32xi1>, vector<8x32xf32>
    %225 = arith.select %175, %221, %171 : vector<8x32xi1>, vector<8x32xf32>
    %c4_i32 = arith.constant 4 : i32
    %226 = vector.broadcast %c4_i32 : i32 to vector<8x1xi32>
    %227 = arith.cmpi sgt, %1, %226 : vector<8x1xi32>
    %228 = vector.shape_cast %227 : vector<8x1xi1> to vector<8x1xi1>
    %229 = vector.broadcast %228 : vector<8x1xi1> to vector<8x32xi1>
    %230 = vector.extract_strided_slice %0 {offsets = [0, 4], sizes = [8, 1], strides = [1, 1]} : vector<8x8xf32> to vector<8x1xf32>
    %231 = vector.broadcast %230 : vector<8x1xf32> to vector<8x128xf32>
    %232 = vector.broadcast %2 : vector<1x128xf32> to vector<8x128xf32>
    %233 = arith.mulf %231, %232 : vector<8x128xf32>
    %234 = vector.broadcast %3 : vector<1x128xf32> to vector<8x128xf32>
    %235 = arith.addf %233, %234 : vector<8x128xf32>
    %236 = arith.truncf %201 : vector<8x32xf32> to vector<8x32xbf16>
    %cst_33 = arith.constant dense<0.000000e+00> : vector<8x128xf32>
    %237 = tpu.matmul %236, %4, %cst_33 {dimension_numbers = #tpu.dot_dimension_numbers<[1], [0], [0], [1], [0, 0, 1, 1], [], []>} : vector<8x32xbf16>, vector<32x128xbf16>, vector<8x128xf32> -> vector<8x128xf32>
    %238 = arith.addf %235, %237 : vector<8x128xf32>
    %239 = vector.extract_strided_slice %238 {offsets = [0, 0], sizes = [8, 96], strides = [1, 1]} : vector<8x128xf32> to vector<8x96xf32>
    %240 = arith.negf %239 : vector<8x96xf32>
    %241 = math.exp %240 : vector<8x96xf32>
    %cst_34 = arith.constant 1.000000e+00 : f32
    %242 = vector.broadcast %cst_34 : f32 to vector<8x96xf32>
    %243 = arith.addf %242, %241 : vector<8x96xf32>
    %244 = arith.divf %242, %243 : vector<8x96xf32>
    %245 = vector.extract_strided_slice %238 {offsets = [0, 96], sizes = [8, 32], strides = [1, 1]} : vector<8x128xf32> to vector<8x32xf32>
    %246 = math.tanh %245 : vector<8x32xf32>
    %247 = vector.extract_strided_slice %244 {offsets = [0, 0], sizes = [8, 32], strides = [1, 1]} : vector<8x96xf32> to vector<8x32xf32>
    %248 = vector.extract_strided_slice %244 {offsets = [0, 32], sizes = [8, 32], strides = [1, 1]} : vector<8x96xf32> to vector<8x32xf32>
    %249 = vector.extract_strided_slice %244 {offsets = [0, 64], sizes = [8, 32], strides = [1, 1]} : vector<8x96xf32> to vector<8x32xf32>
    %250 = arith.mulf %248, %202 : vector<8x32xf32>
    %251 = arith.mulf %247, %246 : vector<8x32xf32>
    %252 = arith.addf %250, %251 : vector<8x32xf32>
    %253 = math.tanh %252 : vector<8x32xf32>
    %254 = arith.mulf %249, %253 : vector<8x32xf32>
    %255 = arith.select %229, %254, %201 : vector<8x32xi1>, vector<8x32xf32>
    %256 = arith.select %229, %252, %202 : vector<8x32xi1>, vector<8x32xf32>
    %257 = tpu.concatenate %255, %224 in 1 : vector<8x32xf32>, vector<8x32xf32> -> vector<8x64xf32>
    %258 = arith.truncf %257 : vector<8x64xf32> to vector<8x64xbf16>
    %cst_35 = arith.constant dense<0.000000e+00> : vector<8x128xf32>
    %259 = tpu.matmul %258, %5, %cst_35 {dimension_numbers = #tpu.dot_dimension_numbers<[1], [0], [0], [1], [0, 0, 1, 1], [], []>} : vector<8x64xbf16>, vector<64x128xbf16>, vector<8x128xf32> -> vector<8x128xf32>
    %260 = vector.broadcast %6 : vector<1x128xf32> to vector<8x128xf32>
    %261 = arith.addf %259, %260 : vector<8x128xf32>
    %262 = vector.extract_strided_slice %261 {offsets = [0, 0], sizes = [8, 96], strides = [1, 1]} : vector<8x128xf32> to vector<8x96xf32>
    %263 = arith.negf %262 : vector<8x96xf32>
    %264 = math.exp %263 : vector<8x96xf32>
    %cst_36 = arith.constant 1.000000e+00 : f32
    %265 = vector.broadcast %cst_36 : f32 to vector<8x96xf32>
    %266 = arith.addf %265, %264 : vector<8x96xf32>
    %267 = arith.divf %265, %266 : vector<8x96xf32>
    %268 = vector.extract_strided_slice %261 {offsets = [0, 96], sizes = [8, 32], strides = [1, 1]} : vector<8x128xf32> to vector<8x32xf32>
    %269 = math.tanh %268 : vector<8x32xf32>
    %270 = vector.extract_strided_slice %267 {offsets = [0, 0], sizes = [8, 32], strides = [1, 1]} : vector<8x96xf32> to vector<8x32xf32>
    %271 = vector.extract_strided_slice %267 {offsets = [0, 32], sizes = [8, 32], strides = [1, 1]} : vector<8x96xf32> to vector<8x32xf32>
    %272 = vector.extract_strided_slice %267 {offsets = [0, 64], sizes = [8, 32], strides = [1, 1]} : vector<8x96xf32> to vector<8x32xf32>
    %273 = arith.mulf %271, %225 : vector<8x32xf32>
    %274 = arith.mulf %270, %269 : vector<8x32xf32>
    %275 = arith.addf %273, %274 : vector<8x32xf32>
    %276 = math.tanh %275 : vector<8x32xf32>
    %277 = arith.mulf %272, %276 : vector<8x32xf32>
    %278 = arith.select %229, %277, %224 : vector<8x32xi1>, vector<8x32xf32>
    %279 = arith.select %229, %275, %225 : vector<8x32xi1>, vector<8x32xf32>
    %c5_i32 = arith.constant 5 : i32
    %280 = vector.broadcast %c5_i32 : i32 to vector<8x1xi32>
    %281 = arith.cmpi sgt, %1, %280 : vector<8x1xi32>
    %282 = vector.shape_cast %281 : vector<8x1xi1> to vector<8x1xi1>
    %283 = vector.broadcast %282 : vector<8x1xi1> to vector<8x32xi1>
    %284 = vector.extract_strided_slice %0 {offsets = [0, 5], sizes = [8, 1], strides = [1, 1]} : vector<8x8xf32> to vector<8x1xf32>
    %285 = vector.broadcast %284 : vector<8x1xf32> to vector<8x128xf32>
    %286 = vector.broadcast %2 : vector<1x128xf32> to vector<8x128xf32>
    %287 = arith.mulf %285, %286 : vector<8x128xf32>
    %288 = vector.broadcast %3 : vector<1x128xf32> to vector<8x128xf32>
    %289 = arith.addf %287, %288 : vector<8x128xf32>
    %290 = arith.truncf %255 : vector<8x32xf32> to vector<8x32xbf16>
    %cst_37 = arith.constant dense<0.000000e+00> : vector<8x128xf32>
    %291 = tpu.matmul %290, %4, %cst_37 {dimension_numbers = #tpu.dot_dimension_numbers<[1], [0], [0], [1], [0, 0, 1, 1], [], []>} : vector<8x32xbf16>, vector<32x128xbf16>, vector<8x128xf32> -> vector<8x128xf32>
    %292 = arith.addf %289, %291 : vector<8x128xf32>
    %293 = vector.extract_strided_slice %292 {offsets = [0, 0], sizes = [8, 96], strides = [1, 1]} : vector<8x128xf32> to vector<8x96xf32>
    %294 = arith.negf %293 : vector<8x96xf32>
    %295 = math.exp %294 : vector<8x96xf32>
    %cst_38 = arith.constant 1.000000e+00 : f32
    %296 = vector.broadcast %cst_38 : f32 to vector<8x96xf32>
    %297 = arith.addf %296, %295 : vector<8x96xf32>
    %298 = arith.divf %296, %297 : vector<8x96xf32>
    %299 = vector.extract_strided_slice %292 {offsets = [0, 96], sizes = [8, 32], strides = [1, 1]} : vector<8x128xf32> to vector<8x32xf32>
    %300 = math.tanh %299 : vector<8x32xf32>
    %301 = vector.extract_strided_slice %298 {offsets = [0, 0], sizes = [8, 32], strides = [1, 1]} : vector<8x96xf32> to vector<8x32xf32>
    %302 = vector.extract_strided_slice %298 {offsets = [0, 32], sizes = [8, 32], strides = [1, 1]} : vector<8x96xf32> to vector<8x32xf32>
    %303 = vector.extract_strided_slice %298 {offsets = [0, 64], sizes = [8, 32], strides = [1, 1]} : vector<8x96xf32> to vector<8x32xf32>
    %304 = arith.mulf %302, %256 : vector<8x32xf32>
    %305 = arith.mulf %301, %300 : vector<8x32xf32>
    %306 = arith.addf %304, %305 : vector<8x32xf32>
    %307 = math.tanh %306 : vector<8x32xf32>
    %308 = arith.mulf %303, %307 : vector<8x32xf32>
    %309 = arith.select %283, %308, %255 : vector<8x32xi1>, vector<8x32xf32>
    %310 = arith.select %283, %306, %256 : vector<8x32xi1>, vector<8x32xf32>
    %311 = tpu.concatenate %309, %278 in 1 : vector<8x32xf32>, vector<8x32xf32> -> vector<8x64xf32>
    %312 = arith.truncf %311 : vector<8x64xf32> to vector<8x64xbf16>
    %cst_39 = arith.constant dense<0.000000e+00> : vector<8x128xf32>
    %313 = tpu.matmul %312, %5, %cst_39 {dimension_numbers = #tpu.dot_dimension_numbers<[1], [0], [0], [1], [0, 0, 1, 1], [], []>} : vector<8x64xbf16>, vector<64x128xbf16>, vector<8x128xf32> -> vector<8x128xf32>
    %314 = vector.broadcast %6 : vector<1x128xf32> to vector<8x128xf32>
    %315 = arith.addf %313, %314 : vector<8x128xf32>
    %316 = vector.extract_strided_slice %315 {offsets = [0, 0], sizes = [8, 96], strides = [1, 1]} : vector<8x128xf32> to vector<8x96xf32>
    %317 = arith.negf %316 : vector<8x96xf32>
    %318 = math.exp %317 : vector<8x96xf32>
    %cst_40 = arith.constant 1.000000e+00 : f32
    %319 = vector.broadcast %cst_40 : f32 to vector<8x96xf32>
    %320 = arith.addf %319, %318 : vector<8x96xf32>
    %321 = arith.divf %319, %320 : vector<8x96xf32>
    %322 = vector.extract_strided_slice %315 {offsets = [0, 96], sizes = [8, 32], strides = [1, 1]} : vector<8x128xf32> to vector<8x32xf32>
    %323 = math.tanh %322 : vector<8x32xf32>
    %324 = vector.extract_strided_slice %321 {offsets = [0, 0], sizes = [8, 32], strides = [1, 1]} : vector<8x96xf32> to vector<8x32xf32>
    %325 = vector.extract_strided_slice %321 {offsets = [0, 32], sizes = [8, 32], strides = [1, 1]} : vector<8x96xf32> to vector<8x32xf32>
    %326 = vector.extract_strided_slice %321 {offsets = [0, 64], sizes = [8, 32], strides = [1, 1]} : vector<8x96xf32> to vector<8x32xf32>
    %327 = arith.mulf %325, %279 : vector<8x32xf32>
    %328 = arith.mulf %324, %323 : vector<8x32xf32>
    %329 = arith.addf %327, %328 : vector<8x32xf32>
    %330 = math.tanh %329 : vector<8x32xf32>
    %331 = arith.mulf %326, %330 : vector<8x32xf32>
    %332 = arith.select %283, %331, %278 : vector<8x32xi1>, vector<8x32xf32>
    %333 = arith.select %283, %329, %279 : vector<8x32xi1>, vector<8x32xf32>
    %c6_i32 = arith.constant 6 : i32
    %334 = vector.broadcast %c6_i32 : i32 to vector<8x1xi32>
    %335 = arith.cmpi sgt, %1, %334 : vector<8x1xi32>
    %336 = vector.shape_cast %335 : vector<8x1xi1> to vector<8x1xi1>
    %337 = vector.broadcast %336 : vector<8x1xi1> to vector<8x32xi1>
    %338 = vector.extract_strided_slice %0 {offsets = [0, 6], sizes = [8, 1], strides = [1, 1]} : vector<8x8xf32> to vector<8x1xf32>
    %339 = vector.broadcast %338 : vector<8x1xf32> to vector<8x128xf32>
    %340 = vector.broadcast %2 : vector<1x128xf32> to vector<8x128xf32>
    %341 = arith.mulf %339, %340 : vector<8x128xf32>
    %342 = vector.broadcast %3 : vector<1x128xf32> to vector<8x128xf32>
    %343 = arith.addf %341, %342 : vector<8x128xf32>
    %344 = arith.truncf %309 : vector<8x32xf32> to vector<8x32xbf16>
    %cst_41 = arith.constant dense<0.000000e+00> : vector<8x128xf32>
    %345 = tpu.matmul %344, %4, %cst_41 {dimension_numbers = #tpu.dot_dimension_numbers<[1], [0], [0], [1], [0, 0, 1, 1], [], []>} : vector<8x32xbf16>, vector<32x128xbf16>, vector<8x128xf32> -> vector<8x128xf32>
    %346 = arith.addf %343, %345 : vector<8x128xf32>
    %347 = vector.extract_strided_slice %346 {offsets = [0, 0], sizes = [8, 96], strides = [1, 1]} : vector<8x128xf32> to vector<8x96xf32>
    %348 = arith.negf %347 : vector<8x96xf32>
    %349 = math.exp %348 : vector<8x96xf32>
    %cst_42 = arith.constant 1.000000e+00 : f32
    %350 = vector.broadcast %cst_42 : f32 to vector<8x96xf32>
    %351 = arith.addf %350, %349 : vector<8x96xf32>
    %352 = arith.divf %350, %351 : vector<8x96xf32>
    %353 = vector.extract_strided_slice %346 {offsets = [0, 96], sizes = [8, 32], strides = [1, 1]} : vector<8x128xf32> to vector<8x32xf32>
    %354 = math.tanh %353 : vector<8x32xf32>
    %355 = vector.extract_strided_slice %352 {offsets = [0, 0], sizes = [8, 32], strides = [1, 1]} : vector<8x96xf32> to vector<8x32xf32>
    %356 = vector.extract_strided_slice %352 {offsets = [0, 32], sizes = [8, 32], strides = [1, 1]} : vector<8x96xf32> to vector<8x32xf32>
    %357 = vector.extract_strided_slice %352 {offsets = [0, 64], sizes = [8, 32], strides = [1, 1]} : vector<8x96xf32> to vector<8x32xf32>
    %358 = arith.mulf %356, %310 : vector<8x32xf32>
    %359 = arith.mulf %355, %354 : vector<8x32xf32>
    %360 = arith.addf %358, %359 : vector<8x32xf32>
    %361 = math.tanh %360 : vector<8x32xf32>
    %362 = arith.mulf %357, %361 : vector<8x32xf32>
    %363 = arith.select %337, %362, %309 : vector<8x32xi1>, vector<8x32xf32>
    %364 = arith.select %337, %360, %310 : vector<8x32xi1>, vector<8x32xf32>
    %365 = tpu.concatenate %363, %332 in 1 : vector<8x32xf32>, vector<8x32xf32> -> vector<8x64xf32>
    %366 = arith.truncf %365 : vector<8x64xf32> to vector<8x64xbf16>
    %cst_43 = arith.constant dense<0.000000e+00> : vector<8x128xf32>
    %367 = tpu.matmul %366, %5, %cst_43 {dimension_numbers = #tpu.dot_dimension_numbers<[1], [0], [0], [1], [0, 0, 1, 1], [], []>} : vector<8x64xbf16>, vector<64x128xbf16>, vector<8x128xf32> -> vector<8x128xf32>
    %368 = vector.broadcast %6 : vector<1x128xf32> to vector<8x128xf32>
    %369 = arith.addf %367, %368 : vector<8x128xf32>
    %370 = vector.extract_strided_slice %369 {offsets = [0, 0], sizes = [8, 96], strides = [1, 1]} : vector<8x128xf32> to vector<8x96xf32>
    %371 = arith.negf %370 : vector<8x96xf32>
    %372 = math.exp %371 : vector<8x96xf32>
    %cst_44 = arith.constant 1.000000e+00 : f32
    %373 = vector.broadcast %cst_44 : f32 to vector<8x96xf32>
    %374 = arith.addf %373, %372 : vector<8x96xf32>
    %375 = arith.divf %373, %374 : vector<8x96xf32>
    %376 = vector.extract_strided_slice %369 {offsets = [0, 96], sizes = [8, 32], strides = [1, 1]} : vector<8x128xf32> to vector<8x32xf32>
    %377 = math.tanh %376 : vector<8x32xf32>
    %378 = vector.extract_strided_slice %375 {offsets = [0, 0], sizes = [8, 32], strides = [1, 1]} : vector<8x96xf32> to vector<8x32xf32>
    %379 = vector.extract_strided_slice %375 {offsets = [0, 32], sizes = [8, 32], strides = [1, 1]} : vector<8x96xf32> to vector<8x32xf32>
    %380 = vector.extract_strided_slice %375 {offsets = [0, 64], sizes = [8, 32], strides = [1, 1]} : vector<8x96xf32> to vector<8x32xf32>
    %381 = arith.mulf %379, %333 : vector<8x32xf32>
    %382 = arith.mulf %378, %377 : vector<8x32xf32>
    %383 = arith.addf %381, %382 : vector<8x32xf32>
    %384 = math.tanh %383 : vector<8x32xf32>
    %385 = arith.mulf %380, %384 : vector<8x32xf32>
    %386 = arith.select %337, %385, %332 : vector<8x32xi1>, vector<8x32xf32>
    %387 = arith.select %337, %383, %333 : vector<8x32xi1>, vector<8x32xf32>
    %c7_i32 = arith.constant 7 : i32
    %388 = vector.broadcast %c7_i32 : i32 to vector<8x1xi32>
    %389 = arith.cmpi sgt, %1, %388 : vector<8x1xi32>
    %390 = vector.shape_cast %389 : vector<8x1xi1> to vector<8x1xi1>
    %391 = vector.broadcast %390 : vector<8x1xi1> to vector<8x32xi1>
    %392 = vector.extract_strided_slice %0 {offsets = [0, 7], sizes = [8, 1], strides = [1, 1]} : vector<8x8xf32> to vector<8x1xf32>
    %393 = vector.broadcast %392 : vector<8x1xf32> to vector<8x128xf32>
    %394 = vector.broadcast %2 : vector<1x128xf32> to vector<8x128xf32>
    %395 = arith.mulf %393, %394 : vector<8x128xf32>
    %396 = vector.broadcast %3 : vector<1x128xf32> to vector<8x128xf32>
    %397 = arith.addf %395, %396 : vector<8x128xf32>
    %398 = arith.truncf %363 : vector<8x32xf32> to vector<8x32xbf16>
    %cst_45 = arith.constant dense<0.000000e+00> : vector<8x128xf32>
    %399 = tpu.matmul %398, %4, %cst_45 {dimension_numbers = #tpu.dot_dimension_numbers<[1], [0], [0], [1], [0, 0, 1, 1], [], []>} : vector<8x32xbf16>, vector<32x128xbf16>, vector<8x128xf32> -> vector<8x128xf32>
    %400 = arith.addf %397, %399 : vector<8x128xf32>
    %401 = vector.extract_strided_slice %400 {offsets = [0, 0], sizes = [8, 96], strides = [1, 1]} : vector<8x128xf32> to vector<8x96xf32>
    %402 = arith.negf %401 : vector<8x96xf32>
    %403 = math.exp %402 : vector<8x96xf32>
    %cst_46 = arith.constant 1.000000e+00 : f32
    %404 = vector.broadcast %cst_46 : f32 to vector<8x96xf32>
    %405 = arith.addf %404, %403 : vector<8x96xf32>
    %406 = arith.divf %404, %405 : vector<8x96xf32>
    %407 = vector.extract_strided_slice %400 {offsets = [0, 96], sizes = [8, 32], strides = [1, 1]} : vector<8x128xf32> to vector<8x32xf32>
    %408 = math.tanh %407 : vector<8x32xf32>
    %409 = vector.extract_strided_slice %406 {offsets = [0, 0], sizes = [8, 32], strides = [1, 1]} : vector<8x96xf32> to vector<8x32xf32>
    %410 = vector.extract_strided_slice %406 {offsets = [0, 32], sizes = [8, 32], strides = [1, 1]} : vector<8x96xf32> to vector<8x32xf32>
    %411 = vector.extract_strided_slice %406 {offsets = [0, 64], sizes = [8, 32], strides = [1, 1]} : vector<8x96xf32> to vector<8x32xf32>
    %412 = arith.mulf %410, %364 : vector<8x32xf32>
    %413 = arith.mulf %409, %408 : vector<8x32xf32>
    %414 = arith.addf %412, %413 : vector<8x32xf32>
    %415 = math.tanh %414 : vector<8x32xf32>
    %416 = arith.mulf %411, %415 : vector<8x32xf32>
    %417 = arith.select %391, %416, %363 : vector<8x32xi1>, vector<8x32xf32>
    %418 = tpu.concatenate %417, %386 in 1 : vector<8x32xf32>, vector<8x32xf32> -> vector<8x64xf32>
    %419 = arith.truncf %418 : vector<8x64xf32> to vector<8x64xbf16>
    %cst_47 = arith.constant dense<0.000000e+00> : vector<8x128xf32>
    %420 = tpu.matmul %419, %5, %cst_47 {dimension_numbers = #tpu.dot_dimension_numbers<[1], [0], [0], [1], [0, 0, 1, 1], [], []>} : vector<8x64xbf16>, vector<64x128xbf16>, vector<8x128xf32> -> vector<8x128xf32>
    %421 = vector.broadcast %6 : vector<1x128xf32> to vector<8x128xf32>
    %422 = arith.addf %420, %421 : vector<8x128xf32>
    %423 = vector.extract_strided_slice %422 {offsets = [0, 0], sizes = [8, 96], strides = [1, 1]} : vector<8x128xf32> to vector<8x96xf32>
    %424 = arith.negf %423 : vector<8x96xf32>
    %425 = math.exp %424 : vector<8x96xf32>
    %cst_48 = arith.constant 1.000000e+00 : f32
    %426 = vector.broadcast %cst_48 : f32 to vector<8x96xf32>
    %427 = arith.addf %426, %425 : vector<8x96xf32>
    %428 = arith.divf %426, %427 : vector<8x96xf32>
    %429 = vector.extract_strided_slice %422 {offsets = [0, 96], sizes = [8, 32], strides = [1, 1]} : vector<8x128xf32> to vector<8x32xf32>
    %430 = math.tanh %429 : vector<8x32xf32>
    %431 = vector.extract_strided_slice %428 {offsets = [0, 0], sizes = [8, 32], strides = [1, 1]} : vector<8x96xf32> to vector<8x32xf32>
    %432 = vector.extract_strided_slice %428 {offsets = [0, 32], sizes = [8, 32], strides = [1, 1]} : vector<8x96xf32> to vector<8x32xf32>
    %433 = vector.extract_strided_slice %428 {offsets = [0, 64], sizes = [8, 32], strides = [1, 1]} : vector<8x96xf32> to vector<8x32xf32>
    %434 = arith.mulf %432, %387 : vector<8x32xf32>
    %435 = arith.mulf %431, %430 : vector<8x32xf32>
    %436 = arith.addf %434, %435 : vector<8x32xf32>
    %437 = math.tanh %436 : vector<8x32xf32>
    %438 = arith.mulf %433, %437 : vector<8x32xf32>
    %439 = arith.select %391, %438, %386 : vector<8x32xi1>, vector<8x32xf32>
    %440 = vector.broadcast %7 : vector<1x32xf32> to vector<8x32xf32>
    %441 = arith.mulf %439, %440 : vector<8x32xf32>
    %cst_49 = arith.constant dense<0.000000e+00> : vector<8xf32>
    %442 = vector.multi_reduction <add>, %441, %cst_49 [1] : vector<8x32xf32> to vector<8xf32>
    %443 = vector.shape_cast %442 : vector<8xf32> to vector<8x1xf32>
    %444 = vector.broadcast %8 : vector<1x1xf32> to vector<8x1xf32>
    %445 = arith.addf %443, %444 : vector<8x1xf32>
    %446 = tpu.transpose %445, [1, 0] : vector<8x1xf32> -> vector<1x8xf32>
    %447 = vector.shape_cast %446 : vector<1x8xf32> to vector<1x1x8xf32>
    %c0_50 = arith.constant 0 : index
    %c0_51 = arith.constant 0 : index
    %c0_52 = arith.constant 0 : index
    %448 = vector.load %arg10[%c0_50, %c0_51, %c0_52] : memref<1x1x8xf32, #tpu.memory_space<vmem>>, vector<1x1x8xf32>
    tpu.vector_store %arg10[%c0_50, %c0_51, %c0_52], %447 {strides = array<i32>} : memref<1x1x8xf32, #tpu.memory_space<vmem>>, vector<1x1x8xf32>,
    return
  }
  func.func @transform_0(%arg0: i32) -> (i32, i32) {
    %c0_i32 = arith.constant 0 : i32
    %c0_i32_0 = arith.constant 0 : i32
    return %arg0, %c0_i32 : i32, i32
  }
  func.func @transform_1(%arg0: i32) -> (i32, i32) {
    %c0_i32 = arith.constant 0 : i32
    %c0_i32_0 = arith.constant 0 : i32
    return %arg0, %c0_i32 : i32, i32
  }
  func.func @transform_2(%arg0: i32) -> (i32, i32) {
    %c0_i32 = arith.constant 0 : i32
    %c0_i32_0 = arith.constant 0 : i32
    %c0_i32_1 = arith.constant 0 : i32
    return %c0_i32, %c0_i32_0 : i32, i32
  }
  func.func @transform_3(%arg0: i32) -> (i32, i32) {
    %c0_i32 = arith.constant 0 : i32
    %c0_i32_0 = arith.constant 0 : i32
    %c0_i32_1 = arith.constant 0 : i32
    return %c0_i32, %c0_i32_0 : i32, i32
  }
  func.func @transform_4(%arg0: i32) -> (i32, i32) {
    %c0_i32 = arith.constant 0 : i32
    %c0_i32_0 = arith.constant 0 : i32
    %c0_i32_1 = arith.constant 0 : i32
    return %c0_i32, %c0_i32_0 : i32, i32
  }
  func.func @transform_5(%arg0: i32) -> (i32, i32) {
    %c0_i32 = arith.constant 0 : i32
    %c0_i32_0 = arith.constant 0 : i32
    %c0_i32_1 = arith.constant 0 : i32
    return %c0_i32, %c0_i32_0 : i32, i32
  }
  func.func @transform_6(%arg0: i32) -> (i32, i32) {
    %c0_i32 = arith.constant 0 : i32
    %c0_i32_0 = arith.constant 0 : i32
    %c0_i32_1 = arith.constant 0 : i32
    return %c0_i32, %c0_i32_0 : i32, i32
  }
  func.func @transform_7(%arg0: i32) -> (i32, i32) {
    %c0_i32 = arith.constant 0 : i32
    %c0_i32_0 = arith.constant 0 : i32
    %c0_i32_1 = arith.constant 0 : i32
    return %c0_i32, %c0_i32_0 : i32, i32
  }
  func.func @transform_8(%arg0: i32) -> (i32, i32) {
    %c0_i32 = arith.constant 0 : i32
    %c0_i32_0 = arith.constant 0 : i32
    %c0_i32_1 = arith.constant 0 : i32
    return %c0_i32, %c0_i32_0 : i32, i32
  }
  func.func @transform_9(%arg0: i32) -> (i32, i32, i32) {
    %c0_i32 = arith.constant 0 : i32
    %c0_i32_0 = arith.constant 0 : i32
    %c0_i32_1 = arith.constant 0 : i32
    return %arg0, %c0_i32, %c0_i32_0 : i32, i32, i32
  }
}

</mosaic_0001>

<bundles_post_ra>
// kernel: tpu_custom_call.1
= control target key start
LH: loop header
LB: loop body
LE: loop exit
PB: predicated region body
PF: predicated region fallthrough
CT: control target
= control target key end

     0   :  { %s3204_s0 = inlined_call_operand.vmem [shape: f32[16,8], index: 0, kind: input, shape index: {}]   ;;  %s3205_s1 = inlined_call_operand.vmem [shape: s32[16,1], index: 1, kind: input, shape index: {}]   ;;  %s3206_s2 = inlined_call_operand.vmem [shape: f32[1,128], index: 2, kind: input, shape index: {}]   ;;  %s3207_s3 = inlined_call_operand.vmem [shape: f32[1,128], index: 3, kind: input, shape index: {}]   ;;  %s3208_s4 = inlined_call_operand.vmem [shape: bf16[32,128], index: 4, kind: input, shape index: {}]   ;;  %s3209_s5 = inlined_call_operand.vmem [shape: bf16[64,128], index: 5, kind: input, shape index: {}]   ;;  %s3210_s6 = inlined_call_operand.vmem [shape: f32[1,128], index: 6, kind: input, shape index: {}]   ;;  %s3211_s7 = inlined_call_operand.vmem [shape: f32[1,32], index: 7, kind: input, shape index: {}]   ;;  %s3212_s8 = inlined_call_operand.<no memory space> [shape: f32[1,1], index: 8, kind: input, shape index: {}]   ;;  %s3213_s9 = inlined_call_operand.hbm [shape: f32[2,1,8], index: 9, kind: output, shape index: {}]  }
   0x1   :  { %v14_v0 = vstv %s3212_s8 }
   0x2   :  { %15 = vst [vmem:[#allocation2] sm:$0x1] %v14_v0 }
   0x3   :  { %16 = vsyncpa [#allocation4], 0 }
   0x4   :  { %18 = vsyncpa [#allocation4 + $0x1], 0  ;;  %s2486_s11 = smov 0   ;;  %s2488_s12 = smov 0  }
   0x5   :  { %s2490_s13 = smov 0   ;;  %s2492_s14 = smov 0  }
   0x6 LB: > { %s2507_s8 = sadd.s32 4294967295, %s2417_s14   ;;  %s1870_s15 = sadd.s32 4294967294, %s2417_s14   ;;  %s2417_s14 = sphi %s2492_s14, %s3219_s14   ;;  %s2413_s13 = sphi %s2490_s13, %s3218_s13   ;;  %s2409_s12 = sphi %s2488_s12, %s3217_s12   ;;  %s2405_s11 = sphi %s2486_s11, %s3216_s11  }
   0x7   : > { %s2511_s16 = sadd.s32 1, %s2417_s14   ;;  %s230_s17 = sadd.s32 1, %s2413_s13 }
   0x8   : > { %s227_s18 = ssub.s32 %s2417_s14, %s2511_s16  ;;  %p240_p0 = scmp.ne.s32.totalorder %s2413_s13, %s2409_s12 }
   0x9   : > { %p228_p1 = scmp.eq.s32.totalorder %s227_s18, 0  ;;  %p241_p2 = scmp.eq.s32.totalorder %s2507_s8, 1 }
   0xa   : > { %p246_p3 = scmp.ne.s32.totalorder %s2409_s12, %s2405_s11  ;;  %p247_p4 = scmp.eq.s32.totalorder %s1870_s15, 1 }
   0xb   : > { %s2522_s19 = scalar_select %p228_p1, %s2413_s13, %s230_s17  }
   0xc   : > { %p2524_p5 = por %p241_p2, %p240_p0  ;;  %p2528_p6 = por %p247_p4, %p246_p3 }
   0xd   : > { %p1873_p7 = scmp.ge.s32.totalorder %s2417_s14, 1  ;;  %p300_p8 = scmp.lt.s32.totalorder %s2417_s14, 3 }
   0xf   : > { %p301_p9 = pnand %p1873_p7, %p300_p8 }
  0x10   : > { %v2537_v1 = vld [vmem:[%s3208_s4] sm:$0xff] (!%p301_p9)   ;;  %v2419_v2 = vmov (!%p301_p9), 0.0   ;;  %v2545_v3 = vld [vmem:[%s3208_s4 + $0x8] sm:$0xff] (!%p301_p9)   ;;  %vm2420_vm0 = vmmov (!%p301_p9), 0   ;;  %p338_p10 = scmp.lt.s32.totalorder (!%p301_p9), %s2507_s8, 1  ;;  %v2421_v4 = vmov (!%p301_p9), 0  }
  0x11   : > { %304 = sbr.rel (%p301_p9) target bundleno = 6681 (0x1a19), region = 56  ;;  %1985 = vmatprep.subr.bf16.mxu1 (!%p301_p9), %v2419_v2  ;;  %2005 = vmatprep.subr.bf16.mxu0 (!%p301_p9), %v2419_v2  ;;  %v2580_v6 = vld [vmem:[%s3206_s2] ss:$0 sm:$0xff] (!%p301_p9)  ;;  %s2422_s22 = smov (!%p301_p9), 32   ;;  %v2613_v29 = vld [vmem:[%s3209_s5 + $0x8] sm:$0xff] (!%p301_p9)   ;;  %v2620_v30 = vld [vmem:[%s3209_s5 + $0x10] sm:$0xff] (!%p301_p9)  }
  0x12   : > { %1986 = vmatpush3.bf16.msra.mxu1 (!%p301_p9), %v2537_v1  ;;  %1989 = vmatprep.mubr.msk.bf16.mxu1 (!%p301_p9), %vm2420_vm0, %v2419_v2  ;;  %v2586_v9 = vld [vmem:[%s3207_s3] ss:$0 sm:$0xff] (!%p301_p9)  ;;  %v2629_v32 = vld [vmem:[%s3209_s5 + $0x18] sm:$0xff] (!%p301_p9)   ;;  %v2423_v33 = vmov (!%p301_p9), 1   ;;  %s2424_s23 = smov (!%p301_p9), 64   ;;  %vm403_vm3 = vcmask (!%p301_p9), 261120  }
  0x13   : > { %1987 = vmatprep.subr.bf16.mxu1 (!%p301_p9), %v2419_v2  ;;  %2197 = vset.pattern.permute.xlu0 (!%p301_p9), %v2421_v4  ;;  %v2607_v28 = vld [vmem:[%s3209_s5] sm:$0xff] (!%p301_p9)   ;;  %vm510_vm4 = vcmask (!%p301_p9), 523264   ;;  %s1918_s28 = sshll.u32 (!%p301_p9), %s2507_s8, 4 }
  0x14   : > { %2198 = vset.pattern.permute.xlu1 (!%p301_p9), %v2421_v4  ;;  %2006 = vmatpush3.bf16.msra.mxu0 (!%p301_p9), %v2537_v1  ;;  %v2670_v46 = vld [vmem:[%s3210_s6] ss:$0 sm:$0xff] (!%p301_p9)  ;;  %s3162_s15 = scalar_lea.hbm (!%p301_p9), %s3213_s9, %s1918_s28 }
  0x15   : > { %2007 = vmatprep.subr.bf16.mxu0 (!%p301_p9), %v2419_v2  ;;  %2009 = vmatprep.mubr.msk.bf16.mxu0 (!%p301_p9), %vm2420_vm0, %v2419_v2 }
  0x16   : > { %1988 = vmatpush3.bf16.msra.mxu1 (!%p301_p9), %v2545_v3 }
  0x17   : > { %1993 = vmatprep.subr.bf16.mxu1 (!%p301_p9), %v2419_v2 }
  0x18   : > { %s2553_s26 = scalar_select %p338_p10, %s2507_s8, 1  ;;  %2008 = vmatpush3.bf16.msra.mxu0 %v2545_v3 }
  0x19   : > { %1990 = vmatmul.mubr.bf16.vlgmr.msra.gmra.mrb[0].mxu1 %v2421_v4  ;;  %2013 = vmatprep.subr.bf16.mxu0 %v2419_v2  ;;  %s2432_s8 = smov [#allocation3]  }
  0x1a   : > { %s1874_s27 = sshll.u32 %s2553_s26, 3  ;;  %2001 = vmatprep.mubr.msk.bf16.mxu1 %vm2420_vm0, %v2419_v2  ;;  %1994 = vmatpush3.bf16.msra.mxu1 %v2607_v28  ;;  %s336_s26 = sand.u32 1, %s2409_s12  }
  0x1b   : > { %s2565_s30 = scalar_lea.vmem %s3204_s0, %s1874_s27  ;;  %s2593_s25 = scalar_lea.vmem %s3205_s1, %s1874_s27  ;;  %1995 = vmatprep.subr.bf16.mxu1 %v2419_v2 }
  0x1c   : > { %v2569_v5 = vld [vmem:[%s2565_s30] sm:$0xff]  ;;  %s2426_s27 = smov 96   ;;  %s2359_s18 = sshll.u32 %s2432_s8, 4  ;;  %s2360_s18 = int_to_ptr.vmem [resolvable:$false] %s2359_s18 }
  0x1d   : > { %374 = vperm.xlu0 %2197, %v2569_v5   ;;  %v2596_v20 = vld [vmem:[%s2593_s25] sm:$0xff]  ;;  %s2361_s24 = scalar_lea.vmem %s2360_s18, 32 }
  0x1e   : > { %vm366_vm1 = vcmp.gt.s32.totalorder %v2596_v20, 0  ;;  %1996 = vmatpush3.bf16.msra.mxu1 %v2613_v29  ;;  %vm580_vm5 = vcmp.gt.s32.totalorder %v2596_v20, 1  ;;  %vm745_vm7 = vcmp.gt.s32.totalorder %v2596_v20, 2  ;;  %vm910_vm9 = vcmp.gt.s32.totalorder %v2596_v20, 3 }
  0x1f   : > { %v367_v24 = vsel %vm366_vm1, 1, %v2421_v4  ;;  %1997 = vmatprep.subr.bf16.mxu1 %v2419_v2  ;;  %vm1075_vm11 = vcmp.gt.s32.totalorder %v2596_v20, 4  ;;  %vm1240_vm13 = vcmp.gt.s32.totalorder %v2596_v20, 5 }
  0x22   : > { %1998 = vmatpush3.bf16.msra.mxu1 %v2620_v30 }
  0x23   : > { %1999 = vmatprep.subr.bf16.mxu1 %v2419_v2 }
  0x26   : > { %2000 = vmatpush3.bf16.msra.mxu1 %v2629_v32 }
  0x27   : > { %2025 = vmatprep.subr.bf16.mxu1 %v2419_v2 }
  0x9c   : > { %v375_v7 = vpop.permute.xlu0 %374 }
  0x9d   : > { %v383_v8 = vmul.f32 %v2580_v6, %v375_v7 }
  0x9f   : > { %v390_v10 = vadd.f32 %v2586_v9, %v383_v8 }
  0xec   : > { %v441_v11 = vpop.f32.mrb[0].mxu1 }
  0xed   : > { %v447_v12 = vadd.f32 %v441_v11, %v390_v10  ;;  %v1991_v13 = vpop.f32.mrb[1].mxu1 }
  0xee   : > { %v444_v14 = vpop.f32.mrb[2].mxu1 }
  0xef   : > { %2216 = vtanh.f32 %v447_v12  ;;  %v1992_v15 = vpop.f32.mrb[3].mxu1  ;;  %v1880_v17 = vmul.f32 -1.442695, %v447_v12  ;;  %v581_v14 = vsel %vm580_vm5, 1, %v2421_v4 }
  0xf1   : > { %2218 = vpow2.f32 %v1880_v17 }
  0xf9   : > { %v2217_v16 = vpop.eup %2216 }
  0xfa   : > { %457 = vrot.lane.b32.xlu0 %v2217_v16, %s2422_s22 }
  0xfb   : > { %v2219_v18 = vpop.eup %2218 }
  0xfc   : > { %v451_v19 = vadd.f32 1.0, %v2219_v18 }
  0xfe   : > { %2220 = vrcp.f32 %v451_v19 }
 0x108   : > { %v2221_v21 = vpop.eup %2220 }
 0x109   : > { %v455_v25 = vmul.f32 0.0, %v2221_v21 }
 0x16c   : > { %v458_v22 = vpop.permute.xlu0 %457 }
 0x16d   : > { %v460_v23 = vmul.f32 %v2221_v21, %v458_v22 }
 0x16f   : > { %462 = vrot.lane.b32.xlu1 %v460_v23, %s2422_s22 }
 0x173   : > { %369 = vperm.xlu1 %2198, %v367_v24  }
 0x177   : > { %2199 = vset.pattern.permute.xlu1 %v2423_v33 }
 0x1e1   : > { %v463_v26 = vpop.permute.xlu1 %462 }
 0x1e2   : > { %v2601_v27 = vadd.f32 %v463_v26, %v455_v25  ;;  %v2425_v26 = vmov 2  }
 0x1e4   : > { %2222 = vtanh.f32 %v2601_v27 }
 0x1ee   : > { %v2223_v31 = vpop.eup %2222 }
 0x1ef   : > { %468 = vrot.lane.b32.xlu0 %v2223_v31, %s2422_s22 }
 0x1f2   : > { %v2633_v34 = vpop.permute.xlu1 %369 }
 0x1f3   : > { %vm371_vm2 = vcmp.eq.s32.totalorder %v2633_v34, 1 }
 0x1f4   : > { %v2682_v15 = vsel %vm371_vm2, %v2601_v27, 0.0 }
 0x261   : > { %v469_v35 = vpop.permute.xlu0 %468 }
 0x262   : > { %v471_v36 = vmul.f32 %v2221_v21, %v469_v35 }
 0x264   : > { %v2638_v37 = vsel %vm371_vm2, %v471_v36, 0.0 }
 0x265   : > { %475 = vrot.lane.b32.xlu1 %v2638_v37, %s2424_s23  ;;  %v592_v38 = vpack.c.bf16 %v2638_v37, %v2638_v37 }
 0x267   : > { %594 = vrot.lane.b32.xlu0 %v592_v38, %s2424_s23 }
 0x269   : > { %587 = vperm.xlu1 %2199, %v2569_v5  }
 0x2d7   : > { %v476_v39 = vpop.permute.xlu1 %475 }
 0x2d8   : > { %v478_v40 = vsel %vm403_vm3, %v476_v39, 0.0 }
 0x2d9   : > { %v479_v41 = vpack.c.bf16 %v478_v40, %v478_v40  ;;  %v595_v42 = vpop.permute.xlu0 %594 }
 0x2da   : > { %2010 = vmatmul.mubr.msk.bf16.vlgmr.msra.gmra.mrb[0].mxu0 %vm403_vm3, %v595_v42 }
 0x2db   : > { %2002 = vmatmul.mubr.msk.bf16.vlgmr.msra.gmra.mrb[4].mxu1 %vm510_vm4, %v479_v41  ;;  %2014 = vmatpush3.bf16.msra.mxu0 %v2607_v28 }
 0x2dc   : > { %2015 = vmatprep.subr.bf16.mxu0 %v2419_v2  ;;  %2026 = vmatpush3.bf16.msra.mxu1 %v2537_v1 }
 0x2dd   : > { %2027 = vmatprep.subr.bf16.mxu1 %v2419_v2  ;;  %2021 = vmatprep.mubr.msk.bf16.mxu0 %vm2420_vm0, %v2419_v2 }
 0x2de   : > { %2029 = vmatprep.mubr.msk.bf16.mxu1 %vm2420_vm0, %v2419_v2 }
 0x2df   : > { %2016 = vmatpush3.bf16.msra.mxu0 %v2613_v29 }
 0x2e0   : > { %2017 = vmatprep.subr.bf16.mxu0 %v2419_v2  ;;  %2028 = vmatpush3.bf16.msra.mxu1 %v2545_v3 }
 0x2e1   : > { %2033 = vmatprep.subr.bf16.mxu1 %v2419_v2 }
 0x2e3   : > { %2018 = vmatpush3.bf16.msra.mxu0 %v2620_v30 }
 0x2e4   : > { %2019 = vmatprep.subr.bf16.mxu0 %v2419_v2 }
 0x2e7   : > { %2020 = vmatpush3.bf16.msra.mxu0 %v2629_v32 }
 0x2e8   : > { %2045 = vmatprep.subr.bf16.mxu0 %v2419_v2  ;;  %v588_v43 = vpop.permute.xlu1 %587 }
 0x2e9   : > { %v590_v44 = vmul.f32 %v2580_v6, %v588_v43 }
 0x2eb   : > { %v591_v45 = vadd.f32 %v2586_v9, %v590_v44 }
 0x3ad   : > { %v633_v47 = vpop.f32.mrb[0].mxu0 }
 0x3ae   : > { %v639_v48 = vadd.f32 %v633_v47, %v591_v45  ;;  %v548_v49 = vpop.f32.mrb[4].mxu1  ;;  %v2011_v50 = vpop.f32.mrb[1].mxu0 }
 0x3af   : > { %v549_v51 = vadd.f32 %v2670_v46, %v548_v49  ;;  %v2003_v52 = vpop.f32.mrb[5].mxu1  ;;  %v636_v53 = vpop.f32.mrb[2].mxu0 }
 0x3b0   : > { %2224 = vtanh.f32 %v639_v48  ;;  %v551_v54 = vpop.f32.mrb[6].mxu1  ;;  %v2012_v55 = vpop.f32.mrb[3].mxu0  ;;  %v1889_v59 = vmul.f32 -1.442695, %v639_v48 }
 0x3b1   : > { %2226 = vtanh.f32 %v549_v51  ;;  %v2004_v56 = vpop.f32.mrb[7].mxu1  ;;  %v1887_v60 = vmul.f32 -1.442695, %v549_v51 }
 0x3b2   : > { %2228 = vpow2.f32 %v1889_v59 }
 0x3b3   : > { %2230 = vpow2.f32 %v1887_v60 }
 0x3ba   : > { %v2225_v57 = vpop.eup %2224 }
 0x3bb   : > { %v2227_v58 = vpop.eup %2226  ;;  %649 = vrot.lane.b32.xlu1 %v2225_v57, %s2422_s22 }
 0x3bc   : > { %563 = vrot.lane.b32.xlu0 %v2227_v58, %s2422_s22  ;;  %v2229_v61 = vpop.eup %2228 }
 0x3bd   : > { %v2231_v62 = vpop.eup %2230  ;;  %v643_v63 = vadd.f32 1.0, %v2229_v61 }
 0x3be   : > { %v557_v0 = vadd.f32 1.0, %v2231_v62 }
 0x3bf   : > { %2232 = vrcp.f32 %v643_v63 }
 0x3c0   : > { %2234 = vrcp.f32 %v557_v0 }
 0x3c9   : > { %v2233_v7 = vpop.eup %2232 }
 0x3ca   : > { %v2235_v10 = vpop.eup %2234  ;;  %v647_v16 = vmul.f32 %v2233_v7, %v2682_v15 }
 0x3cb   : > { %v561_v18 = vmul.f32 0.0, %v2235_v10 }
 0x42d   : > { %v650_v8 = vpop.permute.xlu1 %649 }
 0x42e   : > { %v652_v11 = vmul.f32 %v2233_v7, %v650_v8  ;;  %v564_v12 = vpop.permute.xlu0 %563 }
 0x42f   : > { %v566_v13 = vmul.f32 %v2235_v10, %v564_v12 }
 0x430   : > { %654 = vrot.lane.b32.xlu1 %v652_v11, %s2422_s22 }
 0x431   : > { %568 = vrot.lane.b32.xlu0 %v566_v13, %s2422_s22 }
 0x435   : > { %583 = vperm.xlu0 %2197, %v581_v14   ;;  %v746_v14 = vsel %vm745_vm7, 1, %v2421_v4 }
 0x439   : > { %2200 = vset.pattern.permute.xlu0 %v2425_v26 }
 0x4a2   : > { %v655_v17 = vpop.permute.xlu1 %654 }
 0x4a3   : > { %v2685_v19 = vadd.f32 %v655_v17, %v647_v16  ;;  %v569_v21 = vpop.permute.xlu0 %568 }
 0x4a4   : > { %v2687_v22 = vadd.f32 %v569_v21, %v561_v18 }
 0x4a5   : > { %2236 = vtanh.f32 %v2685_v19 }
 0x4a6   : > { %2238 = vtanh.f32 %v2687_v22  ;;  %v2745_v17 = vsel %vm371_vm2, %v2687_v22, 0.0 }
 0x4af   : > { %v2237_v23 = vpop.eup %2236 }
 0x4b0   : > { %v2239_v24 = vpop.eup %2238  ;;  %660 = vrot.lane.b32.xlu0 %v2237_v23, %s2422_s22 }
 0x4b1   : > { %574 = vrot.lane.b32.xlu1 %v2239_v24, %s2422_s22 }
 0x4b4   : > { %v2693_v25 = vpop.permute.xlu0 %583 }
 0x4b5   : > { %vm585_vm6 = vcmp.eq.s32.totalorder %v2693_v25, 1 }
 0x4b6   : > { %v2754_v24 = vsel %vm585_vm6, %v2685_v19, %v2682_v15 }
 0x522   : > { %v661_v27 = vpop.permute.xlu0 %660 }
 0x523   : > { %v663_v31 = vmul.f32 %v2233_v7, %v661_v27  ;;  %v575_v33 = vpop.permute.xlu1 %574 }
 0x524   : > { %v577_v35 = vmul.f32 %v2235_v10, %v575_v33 }
 0x525   : > { %v2699_v36 = vsel %vm585_vm6, %v663_v31, %v2638_v37 }
 0x526   : > { %667 = vrot.lane.b32.xlu1 %v2699_v36, %s2424_s23  ;;  %v2705_v38 = vsel %vm371_vm2, %v577_v35, 0.0  ;;  %v757_v39 = vpack.c.bf16 %v2699_v36, %v2699_v36  ;;  %v2427_v35 = vmov 3  }
 0x527   : > { %671 = vrot.lane.b32.xlu0 %v2705_v38, %s2426_s27  ;;  %2202 = vset.pattern.permute.xlu1 %v2427_v35 }
 0x52a   : > { %759 = vrot.lane.b32.xlu1 %v757_v39, %s2424_s23 }
 0x52b   : > { %752 = vperm.xlu0 %2200, %v2569_v5  }
 0x52f   : > { %2201 = vset.pattern.permute.xlu0 %v2421_v4 }
 0x598   : > { %v668_v37 = vpop.permute.xlu1 %667 }
 0x599   : > { %v672_v40 = vpop.permute.xlu0 %671 }
 0x59a   : > { %v674_v41 = vsel %vm403_vm3, %v668_v37, %v672_v40 }
 0x59b   : > { %v675_v42 = vpack.c.bf16 %v674_v41, %v674_v41 }
 0x59c   : > { %v760_v43 = vpop.permute.xlu1 %759 }
 0x59d   : > { %2022 = vmatmul.mubr.msk.bf16.vlgmr.msra.gmra.mrb[4].mxu0 %vm510_vm4, %v675_v42  ;;  %2030 = vmatmul.mubr.msk.bf16.vlgmr.msra.gmra.mrb[8].mxu1 %vm403_vm3, %v760_v43 }
 0x59e   : > { %2034 = vmatpush3.bf16.msra.mxu1 %v2607_v28  ;;  %2046 = vmatpush3.bf16.msra.mxu0 %v2537_v1 }
 0x59f   : > { %2035 = vmatprep.subr.bf16.mxu1 %v2419_v2  ;;  %2047 = vmatprep.subr.bf16.mxu0 %v2419_v2 }
 0x5a0   : > { %2041 = vmatprep.mubr.msk.bf16.mxu1 %vm2420_vm0, %v2419_v2  ;;  %2049 = vmatprep.mubr.msk.bf16.mxu0 %vm2420_vm0, %v2419_v2 }
 0x5a2   : > { %2036 = vmatpush3.bf16.msra.mxu1 %v2613_v29  ;;  %2048 = vmatpush3.bf16.msra.mxu0 %v2545_v3 }
 0x5a3   : > { %2037 = vmatprep.subr.bf16.mxu1 %v2419_v2  ;;  %2053 = vmatprep.subr.bf16.mxu0 %v2419_v2 }
 0x5a6   : > { %2038 = vmatpush3.bf16.msra.mxu1 %v2620_v30 }
 0x5a7   : > { %2039 = vmatprep.subr.bf16.mxu1 %v2419_v2 }
 0x5aa   : > { %2040 = vmatpush3.bf16.msra.mxu1 %v2629_v32  ;;  %v753_v44 = vpop.permute.xlu0 %752 }
 0x5ab   : > { %2065 = vmatprep.subr.bf16.mxu1 %v2419_v2  ;;  %v755_v45 = vmul.f32 %v2580_v6, %v753_v44 }
 0x5ad   : > { %v756_v47 = vadd.f32 %v2586_v9, %v755_v45 }
 0x670   : > { %v713_v48 = vpop.f32.mrb[4].mxu0  ;;  %v798_v49 = vpop.f32.mrb[8].mxu1 }
 0x671   : > { %v714_v50 = vadd.f32 %v2670_v46, %v713_v48  ;;  %v2023_v51 = vpop.f32.mrb[5].mxu0  ;;  %v2031_v52 = vpop.f32.mrb[9].mxu1  ;;  %v804_v55 = vadd.f32 %v798_v49, %v756_v47 }
 0x672   : > { %v716_v53 = vpop.f32.mrb[6].mxu0  ;;  %v801_v54 = vpop.f32.mrb[10].mxu1 }
 0x673   : > { %2240 = vtanh.f32 %v714_v50  ;;  %v2024_v56 = vpop.f32.mrb[7].mxu0  ;;  %v2032_v57 = vpop.f32.mrb[11].mxu1  ;;  %v1891_v60 = vmul.f32 -1.442695, %v714_v50  ;;  %v1893_v61 = vmul.f32 -1.442695, %v804_v55 }
 0x674   : > { %2242 = vtanh.f32 %v804_v55 }
 0x675   : > { %2244 = vpow2.f32 %v1891_v60 }
 0x676   : > { %2246 = vpow2.f32 %v1893_v61 }
 0x67d   : > { %v2241_v58 = vpop.eup %2240 }
 0x67e   : > { %728 = vrot.lane.b32.xlu1 %v2241_v58, %s2422_s22  ;;  %v2243_v59 = vpop.eup %2242 }
 0x67f   : > { %v2245_v62 = vpop.eup %2244 }
 0x680   : > { %v722_v63 = vadd.f32 1.0, %v2245_v62  ;;  %v2247_v0 = vpop.eup %2246 }
 0x681   : > { %v808_v7 = vadd.f32 1.0, %v2247_v0 }
 0x682   : > { %814 = vrot.lane.b32.xlu1 %v2243_v59, %s2422_s22  ;;  %2248 = vrcp.f32 %v722_v63 }
 0x683   : > { %2250 = vrcp.f32 %v808_v7 }
 0x68c   : > { %v2249_v8 = vpop.eup %2248 }
 0x68d   : > { %v2251_v12 = vpop.eup %2250  ;;  %v726_v18 = vmul.f32 %v2249_v8, %v2745_v17 }
 0x68e   : > { %v812_v26 = vmul.f32 %v2251_v12, %v2754_v24 }
 0x6f0   : > { %v729_v10 = vpop.permute.xlu1 %728 }
 0x6f1   : > { %v731_v11 = vmul.f32 %v2249_v8, %v729_v10 }
 0x6f3   : > { %733 = vrot.lane.b32.xlu0 %v731_v11, %s2422_s22 }
 0x6f4   : > { %v815_v13 = vpop.permute.xlu1 %814 }
 0x6f5   : > { %v817_v16 = vmul.f32 %v2251_v12, %v815_v13 }
 0x6f7   : > { %748 = vperm.xlu0 %2201, %v746_v14   ;;  %819 = vrot.lane.b32.xlu1 %v817_v16, %s2422_s22 }
 0x765   : > { %v734_v21 = vpop.permute.xlu0 %733 }
 0x766   : > { %v2748_v23 = vadd.f32 %v734_v21, %v726_v18  ;;  %v911_v21 = vsel %vm910_vm9, 1, %v2421_v4 }
 0x768   : > { %2252 = vtanh.f32 %v2748_v23 }
 0x769   : > { %v820_v27 = vpop.permute.xlu1 %819 }
 0x76a   : > { %v2758_v31 = vadd.f32 %v820_v27, %v812_v26  ;;  %v2816_v26 = vsel %vm585_vm6, %v2748_v23, %v2745_v17 }
 0x76c   : > { %2254 = vtanh.f32 %v2758_v31 }
 0x772   : > { %v2253_v34 = vpop.eup %2252 }
 0x773   : > { %739 = vrot.lane.b32.xlu1 %v2253_v34, %s2422_s22 }
 0x776   : > { %v2255_v22 = vpop.eup %2254  ;;  %v2763_v19 = vpop.permute.xlu0 %748 }
 0x777   : > { %825 = vrot.lane.b32.xlu1 %v2255_v22, %s2422_s22  ;;  %vm750_vm8 = vcmp.eq.s32.totalorder %v2763_v19, 1 }
 0x778   : > { %v2823_v34 = vsel %vm750_vm8, %v2758_v31, %v2754_v24  ;;  %v2428_v24 = vmov 4  }
 0x7e5   : > { %v740_v33 = vpop.permute.xlu1 %739 }
 0x7e6   : > { %v742_v15 = vmul.f32 %v2249_v8, %v740_v33 }
 0x7e8   : > { %v2768_v39 = vsel %vm585_vm6, %v742_v15, %v2705_v38 }
 0x7e9   : > { %836 = vrot.lane.b32.xlu1 %v2768_v39, %s2426_s27  ;;  %v826_v37 = vpop.permute.xlu1 %825 }
 0x7ea   : > { %v828_v40 = vmul.f32 %v2251_v12, %v826_v37 }
 0x7ec   : > { %v2776_v41 = vsel %vm750_vm8, %v828_v40, %v2699_v36 }
 0x7ed   : > { %832 = vrot.lane.b32.xlu0 %v2776_v41, %s2424_s23  ;;  %917 = vperm.xlu1 %2202, %v2569_v5   ;;  %v922_v38 = vpack.c.bf16 %v2776_v41, %v2776_v41 }
 0x7f1   : > { %924 = vrot.lane.b32.xlu0 %v922_v38, %s2424_s23 }
 0x85b   : > { %v837_v42 = vpop.permute.xlu1 %836 }
 0x85f   : > { %v833_v43 = vpop.permute.xlu0 %832 }
 0x860   : > { %v839_v44 = vsel %vm403_vm3, %v833_v43, %v837_v42 }
 0x861   : > { %v840_v45 = vpack.c.bf16 %v839_v44, %v839_v44 }
 0x863   : > { %2042 = vmatmul.mubr.msk.bf16.vlgmr.msra.gmra.mrb[12].mxu1 %vm510_vm4, %v840_v45  ;;  %v925_v47 = vpop.permute.xlu0 %924 }
 0x864   : > { %2050 = vmatmul.mubr.msk.bf16.vlgmr.msra.gmra.mrb[8].mxu0 %vm403_vm3, %v925_v47  ;;  %2066 = vmatpush3.bf16.msra.mxu1 %v2537_v1 }
 0x865   : > { %2054 = vmatpush3.bf16.msra.mxu0 %v2607_v28  ;;  %2067 = vmatprep.subr.bf16.mxu1 %v2419_v2 }
 0x866   : > { %2055 = vmatprep.subr.bf16.mxu0 %v2419_v2  ;;  %2061 = vmatprep.mubr.msk.bf16.mxu0 %vm2420_vm0, %v2419_v2 }
 0x867   : > { %2069 = vmatprep.mubr.msk.bf16.mxu1 %vm2420_vm0, %v2419_v2 }
 0x868   : > { %2068 = vmatpush3.bf16.msra.mxu1 %v2545_v3 }
 0x869   : > { %2056 = vmatpush3.bf16.msra.mxu0 %v2613_v29  ;;  %2073 = vmatprep.subr.bf16.mxu1 %v2419_v2 }
 0x86a   : > { %2057 = vmatprep.subr.bf16.mxu0 %v2419_v2 }
 0x86c   : > { %v918_v36 = vpop.permute.xlu1 %917 }
 0x86d   : > { %2058 = vmatpush3.bf16.msra.mxu0 %v2620_v30  ;;  %v920_v48 = vmul.f32 %v2580_v6, %v918_v36 }
 0x86e   : > { %2059 = vmatprep.subr.bf16.mxu0 %v2419_v2 }
 0x86f   : > { %v921_v49 = vadd.f32 %v2586_v9, %v920_v48 }
 0x871   : > { %2060 = vmatpush3.bf16.msra.mxu0 %v2629_v32 }
 0x872   : > { %2085 = vmatprep.subr.bf16.mxu0 %v2419_v2 }
 0x936   : > { %v878_v50 = vpop.f32.mrb[12].mxu1 }
 0x937   : > { %v879_v51 = vadd.f32 %v2670_v46, %v878_v50  ;;  %v2043_v52 = vpop.f32.mrb[13].mxu1  ;;  %v963_v53 = vpop.f32.mrb[8].mxu0 }
 0x938   : > { %v969_v54 = vadd.f32 %v963_v53, %v921_v49  ;;  %v881_v55 = vpop.f32.mrb[14].mxu1  ;;  %v2051_v56 = vpop.f32.mrb[9].mxu0 }
 0x939   : > { %2256 = vtanh.f32 %v879_v51  ;;  %v2044_v57 = vpop.f32.mrb[15].mxu1  ;;  %v966_v58 = vpop.f32.mrb[10].mxu0  ;;  %v1895_v62 = vmul.f32 -1.442695, %v879_v51 }
 0x93a   : > { %2258 = vtanh.f32 %v969_v54  ;;  %v2052_v59 = vpop.f32.mrb[11].mxu0  ;;  %v1897_v63 = vmul.f32 -1.442695, %v969_v54 }
 0x93b   : > { %2260 = vpow2.f32 %v1895_v62 }
 0x93c   : > { %2262 = vpow2.f32 %v1897_v63 }
 0x943   : > { %v2257_v60 = vpop.eup %2256 }
 0x944   : > { %v2259_v61 = vpop.eup %2258  ;;  %893 = vrot.lane.b32.xlu0 %v2257_v60, %s2422_s22 }
 0x945   : > { %979 = vrot.lane.b32.xlu1 %v2259_v61, %s2422_s22  ;;  %v2261_v0 = vpop.eup %2260 }
 0x946   : > { %v2263_v7 = vpop.eup %2262  ;;  %v887_v8 = vadd.f32 1.0, %v2261_v0 }
 0x947   : > { %v973_v10 = vadd.f32 1.0, %v2263_v7 }
 0x948   : > { %2264 = vrcp.f32 %v887_v8 }
 0x949   : > { %2266 = vrcp.f32 %v973_v10 }
 0x952   : > { %v2265_v11 = vpop.eup %2264 }
 0x953   : > { %v2267_v13 = vpop.eup %2266  ;;  %v891_v27 = vmul.f32 %v2265_v11, %v2816_v26 }
 0x954   : > { %v977_v33 = vmul.f32 %v2267_v13, %v2823_v34 }
 0x9b6   : > { %v894_v12 = vpop.permute.xlu0 %893 }
 0x9b7   : > { %v896_v14 = vmul.f32 %v2265_v11, %v894_v12  ;;  %v980_v16 = vpop.permute.xlu1 %979 }
 0x9b8   : > { %v982_v18 = vmul.f32 %v2267_v13, %v980_v16 }
 0x9b9   : > { %898 = vrot.lane.b32.xlu0 %v896_v14, %s2422_s22 }
 0x9ba   : > { %984 = vrot.lane.b32.xlu1 %v982_v18, %s2422_s22 }
 0x9bd   : > { %913 = vperm.xlu0 %2201, %v911_v21  }
 0x9c1   : > { %2203 = vset.pattern.permute.xlu0 %v2428_v24 }
 0xa2b   : > { %v899_v22 = vpop.permute.xlu0 %898 }
 0xa2c   : > { %v2826_v35 = vadd.f32 %v899_v22, %v891_v27  ;;  %v985_v15 = vpop.permute.xlu1 %984  ;;  %v1076_v27 = vsel %vm1075_vm11, 1, %v2421_v4 }
 0xa2d   : > { %v2828_v37 = vadd.f32 %v985_v15, %v977_v33 }
 0xa2e   : > { %2268 = vtanh.f32 %v2826_v35  ;;  %v2888_v33 = vsel %vm750_vm8, %v2826_v35, %v2816_v26 }
 0xa2f   : > { %2270 = vtanh.f32 %v2828_v37 }
 0xa38   : > { %v2269_v25 = vpop.eup %2268 }
 0xa39   : > { %v2271_v17 = vpop.eup %2270  ;;  %904 = vrot.lane.b32.xlu1 %v2269_v25, %s2422_s22 }
 0xa3a   : > { %990 = vrot.lane.b32.xlu0 %v2271_v17, %s2422_s22 }
 0xa3c   : > { %v2834_v23 = vpop.permute.xlu0 %913 }
 0xa3d   : > { %vm915_vm10 = vcmp.eq.s32.totalorder %v2834_v23, 1 }
 0xa3e   : > { %v2897_v24 = vsel %vm915_vm10, %v2828_v37, %v2823_v34 }
 0xaab   : > { %v905_v31 = vpop.permute.xlu1 %904 }
 0xaac   : > { %v907_v40 = vmul.f32 %v2265_v11, %v905_v31  ;;  %v991_v38 = vpop.permute.xlu0 %990 }
 0xaad   : > { %v993_v42 = vmul.f32 %v2267_v13, %v991_v38 }
 0xaae   : > { %v2840_v43 = vsel %vm750_vm8, %v907_v40, %v2768_v39 }
 0xaaf   : > { %1001 = vrot.lane.b32.xlu0 %v2840_v43, %s2426_s27  ;;  %v2847_v44 = vsel %vm915_vm10, %v993_v42, %v2776_v41  ;;  %v2429_v42 = vmov 5  }
 0xab0   : > { %997 = vrot.lane.b32.xlu1 %v2847_v44, %s2424_s23  ;;  %v1087_v45 = vpack.c.bf16 %v2847_v44, %v2847_v44 }
 0xab1   : > { %2205 = vset.pattern.permute.xlu1 %v2429_v42 }
 0xab3   : > { %1082 = vperm.xlu0 %2203, %v2569_v5  }
 0xab4   : > { %1089 = vrot.lane.b32.xlu1 %v1087_v45, %s2424_s23 }
 0xab7   : > { %2204 = vset.pattern.permute.xlu0 %v2421_v4 }
 0xb21   : > { %v1002_v39 = vpop.permute.xlu0 %1001 }
 0xb22   : > { %v998_v47 = vpop.permute.xlu1 %997 }
 0xb23   : > { %v1004_v36 = vsel %vm403_vm3, %v998_v47, %v1002_v39 }
 0xb24   : > { %v1005_v48 = vpack.c.bf16 %v1004_v36, %v1004_v36 }
 0xb26   : > { %v1090_v49 = vpop.permute.xlu1 %1089  ;;  %2062 = vmatmul.mubr.msk.bf16.vlgmr.msra.gmra.mrb[12].mxu0 %vm510_vm4, %v1005_v48 }
 0xb27   : > { %2070 = vmatmul.mubr.msk.bf16.vlgmr.msra.gmra.mrb[16].mxu1 %vm403_vm3, %v1090_v49  ;;  %2086 = vmatpush3.bf16.msra.mxu0 %v2537_v1 }
 0xb28   : > { %2074 = vmatpush3.bf16.msra.mxu1 %v2607_v28  ;;  %2087 = vmatprep.subr.bf16.mxu0 %v2419_v2 }
 0xb29   : > { %2075 = vmatprep.subr.bf16.mxu1 %v2419_v2  ;;  %2081 = vmatprep.mubr.msk.bf16.mxu1 %vm2420_vm0, %v2419_v2 }
 0xb2a   : > { %2089 = vmatprep.mubr.msk.bf16.mxu0 %vm2420_vm0, %v2419_v2 }
 0xb2b   : > { %2088 = vmatpush3.bf16.msra.mxu0 %v2545_v3 }
 0xb2c   : > { %2076 = vmatpush3.bf16.msra.mxu1 %v2613_v29  ;;  %2093 = vmatprep.subr.bf16.mxu0 %v2419_v2 }
 0xb2d   : > { %2077 = vmatprep.subr.bf16.mxu1 %v2419_v2 }
 0xb30   : > { %2078 = vmatpush3.bf16.msra.mxu1 %v2620_v30 }
 0xb31   : > { %2079 = vmatprep.subr.bf16.mxu1 %v2419_v2 }
 0xb32   : > { %v1083_v41 = vpop.permute.xlu0 %1082 }
 0xb33   : > { %v1085_v50 = vmul.f32 %v2580_v6, %v1083_v41 }
 0xb34   : > { %2080 = vmatpush3.bf16.msra.mxu1 %v2629_v32 }
 0xb35   : > { %2105 = vmatprep.subr.bf16.mxu1 %v2419_v2  ;;  %v1086_v51 = vadd.f32 %v2586_v9, %v1085_v50 }
 0xbf9   : > { %v1043_v52 = vpop.f32.mrb[12].mxu0 }
 0xbfa   : > { %v1044_v53 = vadd.f32 %v2670_v46, %v1043_v52  ;;  %v2063_v54 = vpop.f32.mrb[13].mxu0  ;;  %v1128_v55 = vpop.f32.mrb[16].mxu1 }
 0xbfb   : > { %v1046_v56 = vpop.f32.mrb[14].mxu0  ;;  %v2071_v57 = vpop.f32.mrb[17].mxu1  ;;  %v1134_v58 = vadd.f32 %v1128_v55, %v1086_v51 }
 0xbfc   : > { %2272 = vtanh.f32 %v1044_v53  ;;  %v2064_v59 = vpop.f32.mrb[15].mxu0  ;;  %v1131_v60 = vpop.f32.mrb[18].mxu1  ;;  %v1899_v0 = vmul.f32 -1.442695, %v1044_v53 }
 0xbfd   : > { %v2072_v61 = vpop.f32.mrb[19].mxu1  ;;  %2274 = vtanh.f32 %v1134_v58  ;;  %v1901_v7 = vmul.f32 -1.442695, %v1134_v58 }
 0xbfe   : > { %2276 = vpow2.f32 %v1899_v0 }
 0xbff   : > { %2278 = vpow2.f32 %v1901_v7 }
 0xc06   : > { %v2273_v62 = vpop.eup %2272 }
 0xc07   : > { %1058 = vrot.lane.b32.xlu1 %v2273_v62, %s2422_s22  ;;  %v2275_v63 = vpop.eup %2274 }
 0xc08   : > { %v2277_v8 = vpop.eup %2276 }
 0xc09   : > { %v1052_v10 = vadd.f32 1.0, %v2277_v8  ;;  %v2279_v11 = vpop.eup %2278 }
 0xc0a   : > { %v1138_v12 = vadd.f32 1.0, %v2279_v11 }
 0xc0b   : > { %1144 = vrot.lane.b32.xlu1 %v2275_v63, %s2422_s22  ;;  %2280 = vrcp.f32 %v1052_v10 }
 0xc0c   : > { %2282 = vrcp.f32 %v1138_v12 }
 0xc15   : > { %v2281_v13 = vpop.eup %2280 }
 0xc16   : > { %v2283_v18 = vpop.eup %2282  ;;  %v1056_v15 = vmul.f32 %v2281_v13, %v2888_v33 }
 0xc17   : > { %v1142_v31 = vmul.f32 %v2283_v18, %v2897_v24 }
 0xc79   : > { %v1059_v14 = vpop.permute.xlu1 %1058 }
 0xc7a   : > { %v1061_v16 = vmul.f32 %v2281_v13, %v1059_v14 }
 0xc7c   : > { %1063 = vrot.lane.b32.xlu0 %v1061_v16, %s2422_s22 }
 0xc7d   : > { %v1145_v21 = vpop.permute.xlu1 %1144 }
 0xc7e   : > { %v1147_v22 = vmul.f32 %v2283_v18, %v1145_v21 }
 0xc80   : > { %1078 = vperm.xlu0 %2204, %v1076_v27   ;;  %1149 = vrot.lane.b32.xlu1 %v1147_v22, %s2422_s22 }
 0xcee   : > { %v1064_v25 = vpop.permute.xlu0 %1063 }
 0xcef   : > { %v2891_v17 = vadd.f32 %v1064_v25, %v1056_v15 }
 0xcf1   : > { %2284 = vtanh.f32 %v2891_v17  ;;  %v2959_v21 = vsel %vm915_vm10, %v2891_v17, %v2888_v33 }
 0xcf2   : > { %v1150_v40 = vpop.permute.xlu1 %1149 }
 0xcf3   : > { %v2901_v38 = vadd.f32 %v1150_v40, %v1142_v31 }
 0xcf5   : > { %2286 = vtanh.f32 %v2901_v38 }
 0xcfb   : > { %v2285_v19 = vpop.eup %2284 }
 0xcfc   : > { %1069 = vrot.lane.b32.xlu1 %v2285_v19, %s2422_s22 }
 0xcff   : > { %v2287_v26 = vpop.eup %2286  ;;  %v2906_v37 = vpop.permute.xlu0 %1078 }
 0xd00   : > { %1155 = vrot.lane.b32.xlu1 %v2287_v26, %s2422_s22  ;;  %vm1080_vm12 = vcmp.eq.s32.totalorder %v2906_v37, 1 }
 0xd01   : > { %v2966_v20 = vsel %vm1080_vm12, %v2901_v38, %v2897_v24  ;;  %v2430_v24 = vmov 6  }
 0xd6e   : > { %v1070_v35 = vpop.permute.xlu1 %1069 }
 0xd6f   : > { %v1072_v34 = vmul.f32 %v2281_v13, %v1070_v35 }
 0xd71   : > { %v2911_v45 = vsel %vm915_vm10, %v1072_v34, %v2840_v43 }
 0xd72   : > { %1166 = vrot.lane.b32.xlu1 %v2911_v45, %s2426_s27  ;;  %v1156_v39 = vpop.permute.xlu1 %1155 }
 0xd73   : > { %v1158_v47 = vmul.f32 %v2283_v18, %v1156_v39  ;;  %v1241_v18 = vsel %vm1240_vm13, 1, %v2421_v4 }
 0xd75   : > { %v2919_v36 = vsel %vm1080_vm12, %v1158_v47, %v2847_v44  ;;  %v2997_v47 = vld [vmem:[%s2565_s30] sm:$0xff] }
 0xd76   : > { %1162 = vrot.lane.b32.xlu0 %v2919_v36, %s2424_s23  ;;  %1247 = vperm.xlu1 %2205, %v2569_v5   ;;  %v1252_v43 = vpack.c.bf16 %v2919_v36, %v2919_v36 }
 0xd7a   : > { %1254 = vrot.lane.b32.xlu0 %v1252_v43, %s2424_s23 }
 0xde4   : > { %v1167_v48 = vpop.permute.xlu1 %1166 }
 0xde8   : > { %v1163_v49 = vpop.permute.xlu0 %1162 }
 0xde9   : > { %v1169_v41 = vsel %vm403_vm3, %v1163_v49, %v1167_v48 }
 0xdea   : > { %v1170_v50 = vpack.c.bf16 %v1169_v41, %v1169_v41  ;;  %v2345_v41 = vld [vmem:[%s3208_s4] sm:$0xff]  }
 0xdec   : > { %2082 = vmatmul.mubr.msk.bf16.vlgmr.msra.gmra.mrb[20].mxu1 %vm510_vm4, %v1170_v50  ;;  %v1255_v51 = vpop.permute.xlu0 %1254  ;;  %v2346_v50 = vld [vmem:[%s3208_s4 + $0x8] sm:$0xff]  }
 0xded   : > { %2090 = vmatmul.mubr.msk.bf16.vlgmr.msra.gmra.mrb[16].mxu0 %vm403_vm3, %v1255_v51  ;;  %2106 = vmatpush3.bf16.msra.mxu1 %v2537_v1  ;;  %v3027_v51 = vld [vmem:[%s3206_s2] ss:$0 sm:$0xff] }
 0xdee   : > { %2094 = vmatpush3.bf16.msra.mxu0 %v2607_v28  ;;  %2107 = vmatprep.subr.bf16.mxu1 %v2419_v2 }
 0xdef   : > { %2095 = vmatprep.subr.bf16.mxu0 %v2419_v2  ;;  %2101 = vmatprep.mubr.msk.bf16.mxu0 %vm2420_vm0, %v2419_v2 }
 0xdf0   : > { %2109 = vmatprep.mubr.msk.bf16.mxu1 %vm2420_vm0, %v2419_v2 }
 0xdf1   : > { %2108 = vmatpush3.bf16.msra.mxu1 %v2545_v3 }
 0xdf2   : > { %2096 = vmatpush3.bf16.msra.mxu0 %v2613_v29  ;;  %2113 = vmatprep.subr.bf16.mxu1 %v2419_v2 }
 0xdf3   : > { %2097 = vmatprep.subr.bf16.mxu0 %v2419_v2 }
 0xdf5   : > { %v1248_v1 = vpop.permute.xlu1 %1247 }
 0xdf6   : > { %2098 = vmatpush3.bf16.msra.mxu0 %v2620_v30  ;;  %v1250_v5 = vmul.f32 %v2580_v6, %v1248_v1 }
 0xdf7   : > { %2099 = vmatprep.subr.bf16.mxu0 %v2419_v2 }
 0xdf8   : > { %v1251_v44 = vadd.f32 %v2586_v9, %v1250_v5 }
 0xdfa   : > { %2100 = vmatpush3.bf16.msra.mxu0 %v2629_v32 }
 0xdfb   : > { %2125 = vmatprep.subr.bf16.mxu0 %v2419_v2 }
 0xebf   : > { %v1208_v3 = vpop.f32.mrb[20].mxu1 }
 0xec0   : > { %v1209_v52 = vadd.f32 %v2670_v46, %v1208_v3  ;;  %v2083_v53 = vpop.f32.mrb[21].mxu1  ;;  %v1293_v54 = vpop.f32.mrb[16].mxu0 }
 0xec1   : > { %v1299_v55 = vadd.f32 %v1293_v54, %v1251_v44  ;;  %v1211_v56 = vpop.f32.mrb[22].mxu1  ;;  %v2091_v57 = vpop.f32.mrb[17].mxu0 }
 0xec2   : > { %2288 = vtanh.f32 %v1209_v52  ;;  %v2084_v58 = vpop.f32.mrb[23].mxu1  ;;  %v1296_v59 = vpop.f32.mrb[18].mxu0  ;;  %v1903_v6 = vmul.f32 -1.442695, %v1209_v52 }
 0xec3   : > { %2290 = vtanh.f32 %v1299_v55  ;;  %v2092_v60 = vpop.f32.mrb[19].mxu0  ;;  %v1905_v9 = vmul.f32 -1.442695, %v1299_v55 }
 0xec4   : > { %2292 = vpow2.f32 %v1903_v6 }
 0xec5   : > { %2294 = vpow2.f32 %v1905_v9 }
 0xecc   : > { %v2289_v61 = vpop.eup %2288 }
 0xecd   : > { %v2291_v62 = vpop.eup %2290  ;;  %1223 = vrot.lane.b32.xlu0 %v2289_v61, %s2422_s22 }
 0xece   : > { %1309 = vrot.lane.b32.xlu1 %v2291_v62, %s2422_s22  ;;  %v2293_v63 = vpop.eup %2292 }
 0xecf   : > { %v2295_v0 = vpop.eup %2294  ;;  %v1217_v7 = vadd.f32 1.0, %v2293_v63 }
 0xed0   : > { %v1303_v8 = vadd.f32 1.0, %v2295_v0 }
 0xed1   : > { %2296 = vrcp.f32 %v1217_v7 }
 0xed2   : > { %2298 = vrcp.f32 %v1303_v8  ;;  %v3040_v8 = vld [vmem:[%s2593_s25] sm:$0xff] }
 0xed3   : > { %vm1405_vm15 = vcmp.gt.s32.totalorder %v3040_v8, 6 }
 0xedb   : > { %v2297_v10 = vpop.eup %2296 }
 0xedc   : > { %v2299_v12 = vpop.eup %2298  ;;  %v1221_v27 = vmul.f32 %v2297_v10, %v2959_v21 }
 0xedd   : > { %v1307_v15 = vmul.f32 %v2299_v12, %v2966_v20 }
 0xf3f   : > { %v1224_v11 = vpop.permute.xlu0 %1223 }
 0xf40   : > { %v1226_v13 = vmul.f32 %v2297_v10, %v1224_v11  ;;  %v1310_v14 = vpop.permute.xlu1 %1309 }
 0xf41   : > { %v1312_v16 = vmul.f32 %v2299_v12, %v1310_v14 }
 0xf42   : > { %1228 = vrot.lane.b32.xlu0 %v1226_v13, %s2422_s22 }
 0xf43   : > { %1314 = vrot.lane.b32.xlu1 %v1312_v16, %s2422_s22 }
 0xf46   : > { %1243 = vperm.xlu0 %2204, %v1241_v18  }
 0xf4a   : > { %2206 = vset.pattern.permute.xlu0 %v2430_v24 }
 0xfb4   : > { %v1229_v22 = vpop.permute.xlu0 %1228 }
 0xfb5   : > { %v2969_v25 = vadd.f32 %v1229_v22, %v1221_v27  ;;  %v1315_v31 = vpop.permute.xlu1 %1314 }
 0xfb6   : > { %v2971_v40 = vadd.f32 %v1315_v31, %v1307_v15 }
 0xfb7   : > { %2300 = vtanh.f32 %v2969_v25  ;;  %v3050_v14 = vsel %vm1080_vm12, %v2969_v25, %v2959_v21 }
 0xfb8   : > { %2302 = vtanh.f32 %v2971_v40 }
 0xfc1   : > { %v2301_v23 = vpop.eup %2300 }
 0xfc2   : > { %v2303_v33 = vpop.eup %2302  ;;  %1234 = vrot.lane.b32.xlu1 %v2301_v23, %s2422_s22 }
 0xfc3   : > { %1320 = vrot.lane.b32.xlu0 %v2303_v33, %s2422_s22  ;;  %v2431_v33 = vmov 7  }
 0xfc4   : > { %2208 = vset.pattern.permute.xlu1 %v2431_v33 }
 0xfc5   : > { %v2977_v17 = vpop.permute.xlu0 %1243 }
 0xfc6   : > { %vm1245_vm14 = vcmp.eq.s32.totalorder %v2977_v17, 1 }
 0xfc7   : > { %v3059_v22 = vsel %vm1245_vm14, %v2971_v40, %v2966_v20 }
0x1034   : > { %v1235_v38 = vpop.permute.xlu1 %1234 }
0x1035   : > { %v1237_v19 = vmul.f32 %v2297_v10, %v1235_v38  ;;  %v1321_v26 = vpop.permute.xlu0 %1320 }
0x1036   : > { %v1323_v35 = vmul.f32 %v2299_v12, %v1321_v26  ;;  %v1406_v12 = vsel %vm1405_vm15, 1, %v2421_v4 }
0x1037   : > { %v2983_v42 = vsel %vm1080_vm12, %v1237_v19, %v2911_v45 }
0x1038   : > { %1331 = vrot.lane.b32.xlu0 %v2983_v42, %s2426_s27  ;;  %v2990_v34 = vsel %vm1245_vm14, %v1323_v35, %v2919_v36 }
0x1039   : > { %1327 = vrot.lane.b32.xlu1 %v2990_v34, %s2424_s23  ;;  %v1417_v39 = vpack.c.bf16 %v2990_v34, %v2990_v34 }
0x103c   : > { %1412 = vperm.xlu0 %2206, %v2997_v47  }
0x103d   : > { %1419 = vrot.lane.b32.xlu1 %v1417_v39, %s2424_s23 }
0x1040   : > { %2207 = vset.pattern.permute.xlu0 %v2421_v4 }
0x10aa   : > { %v1332_v45 = vpop.permute.xlu0 %1331 }
0x10ab   : > { %v1328_v43 = vpop.permute.xlu1 %1327 }
0x10ac   : > { %v1334_v48 = vsel %vm403_vm3, %v1328_v43, %v1332_v45 }
0x10ad   : > { %v1335_v36 = vpack.c.bf16 %v1334_v48, %v1334_v48 }
0x10af   : > { %v1420_v49 = vpop.permute.xlu1 %1419  ;;  %2102 = vmatmul.mubr.msk.bf16.vlgmr.msra.gmra.mrb[20].mxu0 %vm510_vm4, %v1335_v36  ;;  %v2352_v36 = vld [vmem:[%s3209_s5 + $0x10] sm:$0xff]  }
0x10b0   : > { %2110 = vmatmul.mubr.msk.bf16.vlgmr.msra.gmra.mrb[24].mxu1 %vm403_vm3, %v1420_v49  ;;  %2126 = vmatpush3.bf16.msra.mxu0 %v2345_v41  ;;  %v2353_v49 = vld [vmem:[%s3209_s5 + $0x18] sm:$0xff]  }
0x10b1   : > { %2114 = vmatpush3.bf16.msra.mxu1 %v2607_v28  ;;  %2127 = vmatprep.subr.bf16.mxu0 %v2419_v2 }
0x10b2   : > { %2115 = vmatprep.subr.bf16.mxu1 %v2419_v2  ;;  %2121 = vmatprep.mubr.msk.bf16.mxu1 %vm2420_vm0, %v2419_v2 }
0x10b3   : > { %2129 = vmatprep.mubr.msk.bf16.mxu0 %vm2420_vm0, %v2419_v2 }
0x10b4   : > { %2128 = vmatpush3.bf16.msra.mxu0 %v2346_v50 }
0x10b5   : > { %2116 = vmatpush3.bf16.msra.mxu1 %v2613_v29  ;;  %2133 = vmatprep.subr.bf16.mxu0 %v2419_v2  ;;  %v3033_v29 = vld [vmem:[%s3207_s3] ss:$0 sm:$0xff] }
0x10b6   : > { %2117 = vmatprep.subr.bf16.mxu1 %v2419_v2 }
0x10b9   : > { %2118 = vmatpush3.bf16.msra.mxu1 %v2620_v30 }
0x10ba   : > { %2119 = vmatprep.subr.bf16.mxu1 %v2419_v2 }
0x10bb   : > { %v1413_v28 = vpop.permute.xlu0 %1412 }
0x10bc   : > { %v1415_v1 = vmul.f32 %v3027_v51, %v1413_v28 }
0x10bd   : > { %2120 = vmatpush3.bf16.msra.mxu1 %v2629_v32 }
0x10be   : > { %v1416_v5 = vadd.f32 %v3033_v29, %v1415_v1 }
0x1182   : > { %v1373_v30 = vpop.f32.mrb[20].mxu0 }
0x1183   : > { %v1374_v44 = vadd.f32 %v2670_v46, %v1373_v30  ;;  %v2103_v3 = vpop.f32.mrb[21].mxu0  ;;  %v1458_v32 = vpop.f32.mrb[24].mxu1 }
0x1184   : > { %v1376_v52 = vpop.f32.mrb[22].mxu0  ;;  %v2111_v53 = vpop.f32.mrb[25].mxu1  ;;  %v1464_v54 = vadd.f32 %v1458_v32, %v1416_v5  ;;  %v3115_v5 = vld [vmem:[%s3210_s6] ss:$0 sm:$0xff] }
0x1185   : > { %2304 = vtanh.f32 %v1374_v44  ;;  %v2104_v55 = vpop.f32.mrb[23].mxu0  ;;  %v1461_v56 = vpop.f32.mrb[26].mxu1  ;;  %v1907_v60 = vmul.f32 -1.442695, %v1374_v44 }
0x1186   : > { %v2112_v57 = vpop.f32.mrb[27].mxu1  ;;  %2306 = vtanh.f32 %v1464_v54  ;;  %v1909_v46 = vmul.f32 -1.442695, %v1464_v54 }
0x1187   : > { %2308 = vpow2.f32 %v1907_v60 }
0x1188   : > { %2310 = vpow2.f32 %v1909_v46 }
0x118f   : > { %v2305_v58 = vpop.eup %2304 }
0x1190   : > { %1388 = vrot.lane.b32.xlu1 %v2305_v58, %s2422_s22  ;;  %v2307_v59 = vpop.eup %2306 }
0x1191   : > { %v2309_v61 = vpop.eup %2308 }
0x1192   : > { %v1382_v62 = vadd.f32 1.0, %v2309_v61  ;;  %v2311_v6 = vpop.eup %2310 }
0x1193   : > { %v1468_v9 = vadd.f32 1.0, %v2311_v6 }
0x1194   : > { %1474 = vrot.lane.b32.xlu1 %v2307_v59, %s2422_s22  ;;  %2312 = vrcp.f32 %v1382_v62 }
0x1195   : > { %2314 = vrcp.f32 %v1468_v9 }
0x119e   : > { %v2313_v63 = vpop.eup %2312 }
0x119f   : > { %v2315_v10 = vpop.eup %2314  ;;  %v1386_v16 = vmul.f32 %v2313_v63, %v3050_v14 }
0x11a0   : > { %v1472_v15 = vmul.f32 %v2315_v10, %v3059_v22 }
0x1202   : > { %v1389_v0 = vpop.permute.xlu1 %1388 }
0x1203   : > { %v1391_v7 = vmul.f32 %v2313_v63, %v1389_v0 }
0x1205   : > { %1393 = vrot.lane.b32.xlu0 %v1391_v7, %s2422_s22 }
0x1206   : > { %v1475_v11 = vpop.permute.xlu1 %1474 }
0x1207   : > { %v1477_v13 = vmul.f32 %v2315_v10, %v1475_v11 }
0x1209   : > { %1408 = vperm.xlu0 %2207, %v1406_v12   ;;  %1479 = vrot.lane.b32.xlu1 %v1477_v13, %s2422_s22 }
0x1277   : > { %v1394_v18 = vpop.permute.xlu0 %1393 }
0x1278   : > { %v3053_v27 = vadd.f32 %v1394_v18, %v1386_v16 }
0x127a   : > { %2316 = vtanh.f32 %v3053_v27 }
0x127b   : > { %v1480_v31 = vpop.permute.xlu1 %1479 }
0x127c   : > { %v3063_v23 = vadd.f32 %v1480_v31, %v1472_v15 }
0x127e   : > { %2318 = vtanh.f32 %v3063_v23 }
0x1284   : > { %v2317_v37 = vpop.eup %2316 }
0x1285   : > { %1399 = vrot.lane.b32.xlu1 %v2317_v37, %s2422_s22 }
0x1288   : > { %v2319_v21 = vpop.eup %2318  ;;  %v3069_v40 = vpop.permute.xlu0 %1408 }
0x1289   : > { %1485 = vrot.lane.b32.xlu1 %v2319_v21, %s2422_s22  ;;  %vm1410_vm1 = vcmp.eq.s32.totalorder %v3069_v40, 1 }
0x12f7   : > { %v1400_v25 = vpop.permute.xlu1 %1399 }
0x12f8   : > { %v1402_v20 = vmul.f32 %v2313_v63, %v1400_v25 }
0x12fa   : > { %v3074_v24 = vsel %vm1245_vm14, %v1402_v20, %v2983_v42 }
0x12fb   : > { %1496 = vrot.lane.b32.xlu1 %v3074_v24, %s2426_s27  ;;  %v1486_v38 = vpop.permute.xlu1 %1485 }
0x12fc   : > { %v1488_v19 = vmul.f32 %v2315_v10, %v1486_v38  ;;  %v1404_v10 = vsel %vm1245_vm14, %v3053_v27, %v3050_v14 }
0x12fe   : > { %v3082_v26 = vsel %vm1410_vm1, %v1488_v19, %v2990_v34  ;;  %v2350_v34 = vld [vmem:[%s3209_s5] sm:$0xff]  }
0x12ff   : > { %1492 = vrot.lane.b32.xlu0 %v3082_v26, %s2424_s23  ;;  %1577 = vperm.xlu1 %2208, %v2997_v47   ;;  %v1582_v35 = vpack.c.bf16 %v3082_v26, %v3082_v26  ;;  %v2351_v47 = vld [vmem:[%s3209_s5 + $0x8] sm:$0xff]  }
0x1303   : > { %1584 = vrot.lane.b32.xlu0 %v1582_v35, %s2424_s23 }
0x136d   : > { %v1497_v42 = vpop.permute.xlu1 %1496 }
0x1371   : > { %v1493_v39 = vpop.permute.xlu0 %1492 }
0x1372   : > { %v1499_v45 = vsel %vm403_vm3, %v1493_v39, %v1497_v42 }
0x1373   : > { %v1500_v43 = vpack.c.bf16 %v1499_v45, %v1499_v45 }
0x1375   : > { %2122 = vmatmul.mubr.msk.bf16.vlgmr.msra.gmra.mrb[28].mxu1 %vm510_vm4, %v1500_v43  ;;  %v1585_v48 = vpop.permute.xlu0 %1584 }
0x1376   : > { %2130 = vmatmul.mubr.msk.bf16.vlgmr.msra.gmra.mrb[24].mxu0 %vm403_vm3, %v1585_v48 }
0x1377   : > { %2134 = vmatpush3.bf16.msra.mxu0 %v2350_v34  ;;  %2141 = vmatprep.mubr.msk.bf16.mxu0 %vm2420_vm0, %v2419_v2  ;;  %vm1570_vm0 = vcmp.gt.s32.totalorder %v3040_v8, 7  ;;  %v1490_v8 = vsel %vm1410_vm1, %v3063_v23, %v3059_v22 }
0x1378   : > { %2135 = vmatprep.subr.bf16.mxu0 %v2419_v2  ;;  %v1571_v7 = vsel %vm1570_vm0, 1, %v2421_v4 }
0x137b   : > { %2136 = vmatpush3.bf16.msra.mxu0 %v2351_v47 }
0x137c   : > { %2137 = vmatprep.subr.bf16.mxu0 %v2419_v2 }
0x137e   : > { %v1578_v41 = vpop.permute.xlu1 %1577 }
0x137f   : > { %2138 = vmatpush3.bf16.msra.mxu0 %v2352_v36  ;;  %v1580_v50 = vmul.f32 %v3027_v51, %v1578_v41 }
0x1380   : > { %2139 = vmatprep.subr.bf16.mxu0 %v2419_v2 }
0x1381   : > { %v1581_v28 = vadd.f32 %v3033_v29, %v1580_v50 }
0x1383   : > { %2140 = vmatpush3.bf16.msra.mxu0 %v2353_v49  ;;  %v1916_v49 = vld [vmem:[%s3211_s7] ss:$0 sm:$0xff] }
0x1448   : > { %v1538_v1 = vpop.f32.mrb[28].mxu1 }
0x1449   : > { %v1539_v30 = vadd.f32 %v3115_v5, %v1538_v1  ;;  %v2123_v44 = vpop.f32.mrb[29].mxu1  ;;  %v1623_v2 = vpop.f32.mrb[24].mxu0 }
0x144a   : > { %v1629_v3 = vadd.f32 %v1623_v2, %v1581_v28  ;;  %v1541_v32 = vpop.f32.mrb[30].mxu1  ;;  %v2131_v52 = vpop.f32.mrb[25].mxu0 }
0x144b   : > { %2320 = vtanh.f32 %v1539_v30  ;;  %v2124_v53 = vpop.f32.mrb[31].mxu1  ;;  %v1626_v54 = vpop.f32.mrb[26].mxu0  ;;  %v1911_v56 = vmul.f32 -1.442695, %v1539_v30 }
0x144c   : > { %2322 = vtanh.f32 %v1629_v3  ;;  %v2132_v51 = vpop.f32.mrb[27].mxu0  ;;  %v1913_v57 = vmul.f32 -1.442695, %v1629_v3  ;;  %v1917_v53 = vld [vmem:[#allocation2] ss:$0 sm:$0xff] }
0x144d   : > { %2324 = vpow2.f32 %v1911_v56 }
0x144e   : > { %2326 = vpow2.f32 %v1913_v57 }
0x1455   : > { %v2321_v55 = vpop.eup %2320 }
0x1456   : > { %v2323_v29 = vpop.eup %2322  ;;  %1553 = vrot.lane.b32.xlu0 %v2321_v55, %s2422_s22 }
0x1457   : > { %1639 = vrot.lane.b32.xlu1 %v2323_v29, %s2422_s22  ;;  %v2325_v58 = vpop.eup %2324 }
0x1458   : > { %v2327_v59 = vpop.eup %2326  ;;  %v1547_v60 = vadd.f32 1.0, %v2325_v58 }
0x1459   : > { %v1633_v46 = vadd.f32 1.0, %v2327_v59 }
0x145a   : > { %2328 = vrcp.f32 %v1547_v60 }
0x145b   : > { %2330 = vrcp.f32 %v1633_v46 }
0x1464   : > { %v2329_v61 = vpop.eup %2328 }
0x1465   : > { %v2331_v6 = vpop.eup %2330  ;;  %v1551_v11 = vmul.f32 %v2329_v61, %v1404_v10 }
0x1466   : > { %v1637_v13 = vmul.f32 %v2331_v6, %v1490_v8 }
0x14c8   : > { %v1554_v62 = vpop.permute.xlu0 %1553 }
0x14c9   : > { %v1556_v9 = vmul.f32 %v2329_v61, %v1554_v62  ;;  %v1640_v63 = vpop.permute.xlu1 %1639 }
0x14ca   : > { %v1642_v0 = vmul.f32 %v2331_v6, %v1640_v63 }
0x14cb   : > { %1558 = vrot.lane.b32.xlu0 %v1556_v9, %s2422_s22 }
0x14cc   : > { %1644 = vrot.lane.b32.xlu1 %v1642_v0, %s2422_s22 }
0x14cf   : > { %1573 = vperm.xlu0 %2207, %v1571_v7  }
0x14d3   : > { %2209 = vset.pattern.permute.xlu0 %v2431_v33 }
0x153d   : > { %v1559_v12 = vpop.permute.xlu0 %1558 }
0x153e   : > { %v1561_v16 = vadd.f32 %v1559_v12, %v1551_v11  ;;  %v1645_v18 = vpop.permute.xlu1 %1644 }
0x153f   : > { %v1647_v15 = vadd.f32 %v1645_v18, %v1637_v13 }
0x1540   : > { %2332 = vtanh.f32 %v1561_v16  ;;  %v1569_v41 = vsel %vm1410_vm1, %v1561_v16, %v1404_v10 }
0x1541   : > { %2334 = vtanh.f32 %v1647_v15 }
0x154a   : > { %v2333_v4 = vpop.eup %2332 }
0x154b   : > { %v2335_v31 = vpop.eup %2334  ;;  %1564 = vrot.lane.b32.xlu1 %v2333_v4, %s2422_s22 }
0x154c   : > { %1650 = vrot.lane.b32.xlu0 %v2335_v31, %s2422_s22 }
0x154e   : > { %v1574_v17 = vpop.permute.xlu0 %1573 }
0x154f   : > { %vm1575_vm2 = vcmp.eq.s32.totalorder %v1574_v17, 1 }
0x15bd   : > { %v1565_v14 = vpop.permute.xlu1 %1564 }
0x15be   : > { %v1567_v27 = vmul.f32 %v2329_v61, %v1565_v14  ;;  %v1651_v37 = vpop.permute.xlu0 %1650 }
0x15bf   : > { %v1653_v21 = vmul.f32 %v2331_v6, %v1651_v37 }
0x15c0   : > { %v1568_v22 = vsel %vm1410_vm1, %v1567_v27, %v3074_v24 }
0x15c1   : > { %1660 = vrot.lane.b32.xlu0 %v1568_v22, %s2426_s27  ;;  %v1654_v23 = vsel %vm1575_vm2, %v1653_v21, %v3082_v26 }
0x15c2   : > { %1656 = vrot.lane.b32.xlu1 %v1654_v23, %s2424_s23 }
0x1633   : > { %v1661_v25 = vpop.permute.xlu0 %1660 }
0x1634   : > { %v1657_v33 = vpop.permute.xlu1 %1656 }
0x1635   : > { %v1663_v20 = vsel %vm403_vm3, %v1657_v33, %v1661_v25 }
0x1636   : > { %v1664_v38 = vpack.c.bf16 %v1663_v20, %v1663_v20 }
0x1638   : > { %2142 = vmatmul.mubr.msk.bf16.vlgmr.msra.gmra.mrb[28].mxu0 %vm510_vm4, %v1664_v38  ;;  %vm1788_vm4 = vcmask 57344  }
0x170b   : > { %v1702_v19 = vpop.f32.mrb[28].mxu0 }
0x170c   : > { %v1703_v35 = vadd.f32 %v3115_v5, %v1702_v19  ;;  %v2143_v42 = vpop.f32.mrb[29].mxu0 }
0x170d   : > { %v1705_v39 = vpop.f32.mrb[30].mxu0 }
0x170e   : > { %2336 = vtanh.f32 %v1703_v35  ;;  %v2144_v24 = vpop.f32.mrb[31].mxu0  ;;  %v1915_v26 = vmul.f32 -1.442695, %v1703_v35 }
0x1710   : > { %2338 = vpow2.f32 %v1915_v26 }
0x1718   : > { %v2337_v45 = vpop.eup %2336 }
0x1719   : > { %1717 = vrot.lane.b32.xlu1 %v2337_v45, %s2422_s22 }
0x171a   : > { %v2339_v43 = vpop.eup %2338 }
0x171b   : > { %v1711_v48 = vadd.f32 1.0, %v2339_v43 }
0x171d   : > { %2340 = vrcp.f32 %v1711_v48 }
0x1727   : > { %v2341_v34 = vpop.eup %2340 }
0x1728   : > { %v1715_v50 = vmul.f32 %v2341_v34, %v1569_v41 }
0x178b   : > { %v1718_v47 = vpop.permute.xlu1 %1717 }
0x178c   : > { %v1720_v36 = vmul.f32 %v2341_v34, %v1718_v47 }
0x178e   : > { %1722 = vrot.lane.b32.xlu0 %v1720_v36, %s2422_s22 }
0x1792   : > { %1738 = vrot.lane.b32.xlu0 %v1916_v49, %s2424_s23 }
0x1800   : > { %v1723_v28 = vpop.permute.xlu0 %1722 }
0x1801   : > { %v1725_v1 = vadd.f32 %v1723_v28, %v1715_v50 }
0x1803   : > { %2342 = vtanh.f32 %v1725_v1 }
0x1804   : > { %v1739_v2 = vpop.permute.xlu0 %1738 }
0x180d   : > { %v2343_v5 = vpop.eup %2342 }
0x180e   : > { %1728 = vrot.lane.b32.xlu1 %v2343_v5, %s2422_s22  ;;  %s337_s22 = scalar_lea.vmem [#allocation3], %s336_s26 }
0x180f   : > { %s1803_s29 = sshll.u32 %s337_s22, 4  ;;  %s3164_s29 = int_to_ptr.vmem [resolvable:$true] %s1803_s29 }
0x1810   : > { %s2355_s17 = scalar_lea.vmem %s3164_s29, 16  ;;  %p2362_p0 = scmp.lt.s32.totalorder %s3164_s29, %s2360_s18 }
0x1811   : > { %p2356_p11 = scmp.ne.s32.totalorder %s3164_s29, %s2355_s17  ;;  %p2363_p1 = scmp.lt.s32.totalorder %s2361_s24, %s2355_s17 }
0x1813   : > { %p2357_p12 = pnand %p2356_p11, %p2524_p5  ;;  %p2364_p2 = por %p2363_p1, %p2362_p0 }
0x1815   : > { %p2358_p13 = pneg %p2357_p12 }
0x1817   : > { %p2365_p3 = pnand %p2364_p2, %p2358_p13 }
0x1880   : > { %v1729_v30 = vpop.permute.xlu1 %1728 }
0x1881   : > { %v1731_v44 = vmul.f32 %v2341_v34, %v1729_v30 }
0x1883   : > { %v1732_v3 = vsel %vm1575_vm2, %v1731_v44, %v1568_v22 }
0x1884   : > { %v1741_v32 = vmul.f32 %v1739_v2, %v1732_v3 }
0x1886   : > { %1743 = vrot.lane.b32.xlu1 %v1741_v32, %s2424_s23  ;;  %s1791_s23 = scalar_lea.sflag [#allocation4], %s336_s26 }
0x18f8   : > { %v1744_v52 = vpop.permute.xlu1 %1743 }
0x18f9   : > { %v1746_v40 = vsel %vm403_vm3, %v1744_v52, 0.0 }
0x18fa   : > { %1747 = vadd.xlane.f32.xlu0 %v1746_v40 }
0x1987   : > { %v1748_v54 = vpop.xlane.xlu0 %1747 }
0x1988   : > { %v1755_v51 = vadd.f32 %v1917_v53, %v1748_v54 }
0x198a   : > { %1756 = vxpose.xlu1.b32.start.end [1/1] (short) (narrow) %v1755_v51, 8 }
0x1a0a   : > { %v1772_v55 = vpop.trf.xlu1 }
0x1a0b   : > { %1789 = vst.msk [vmem:[%s337_s22] sm:$0x1] %vm1788_vm4, %v1772_v55 }
0x1a0c   : > { %2368 = shalt.err (!%p2365_p3)
}
0x1a0d   : > { %s2369_s27 = scalar_lea.hbm %s3162_s15, 16  ;;  %s2373_s28 = scalar_lea.hbm %s3213_s9, 32 }
0x1a0e   : > { %p2370_p4 = scmp.ne.s32.totalorder %s3162_s15, %s2369_s27  ;;  %p2374_p9 = scmp.lt.u32.totalorder %s3162_s15, %s3213_s9 }
0x1a0f   : > { %p2375_p10 = scmp.lt.u32.totalorder %s2373_s28, %s2369_s27  ;;  %p2377_p12 = scmp.lt.u32.totalorder %s2369_s27, %s3162_s15 }
0x1a10   : > { %p2371_p7 = pnand %p2370_p4, %p2524_p5 }
0x1a11   : > { %p2376_p11 = por %p2375_p10, %p2374_p9 }
0x1a12   : > { %p2372_p8 = pneg %p2371_p7 }
0x1a13   : > { %p2378_p13 = por %p2377_p12, %p2376_p11 }
0x1a15   : > { %p2379_p0 = pnand %p2378_p13, %p2372_p8 }
0x1a17   : > { %2382 = shalt.err (!%p2379_p0)
}
0x1a18   : > { %2145 = dma.vmem_to_hbm [thread:$0]  (%p2524_p5), %s3164_s29, 16, %s3162_s15, %s1791_s23  }
0x1a19 PF: > { %p2151_p1 = scmp.ge.s32.totalorder %s2417_s14, 2  ;;  %s1815_s10 = sand.u32 1, %s2405_s11  }
0x1a1a   : > { %s1816_s17 = scalar_lea.sflag [#allocation4], %s1815_s10 }
0x1a1b   : > { %p2148_p2 = pnand %p2151_p1, %p2528_p6 }
0x1a1d   : > { %2400 = dma.done.wait (!%p2148_p2), %s1816_s17, 16  }
0x1a1e   : > { %2402 = vsyncadd (!%p2148_p2), %s1816_s17, 4294967280  ;;  %p21_p3 = scmp.ge.s32.totalorder %s2511_s16, 4   ;;  %s3216_s11 = smov %s2409_s12 }
0x1a1f   : > { %s3217_s12 = smov %s2413_s13  ;;  %s3218_s13 = smov %s2522_s19 }
0x1a20   : > { %s3219_s14 = smov %s2511_s16  ;;  %23 = sbr.rel (!%p21_p3) target bundleno = 6 (0x6), region = 94 }
0x1a27   :  { %1820 = vsyncpa [#allocation4], 1 }
0x1a28   :  { %1822 = vsyncpa [#allocation4 + $0x1], 1 }

</bundles_post_ra>
